<compile_context>
chip_gen: v5e
topology: v5e:2x2
jax: 0.10.0
libtpu: 0.0.40
codegen_flags: <defaults>
</compile_context>

<pallas_src>
import functools

import jax
import jax.numpy as jnp
import numpy as np
from jax.experimental import pallas as pl
from jax.experimental.pallas import tpu as pltpu


# ----------------------------- Pallas kernel --------------------------------
def decoder_kernel(features_ref, tok_ref,
                   w_lin_ref, b_lin_ref,
                   w_ih0_feat_ref, w_ih0_tok_ref, w_ih_rest_ref,
                   w_hh_ref, b_all_ref,
                   w_x_ref, b_x_ref, w_c_ref, b_c_ref,
                   out_ref, hiddens_ref, cells_ref,
                   layer_buf, gates_buf,
                   *, B, H, T, NL):
    f32 = jnp.float32

    # hidden, cell = split(tanh(Linear(features)), H)
    feats = features_ref[...]                                              # [B, F]
    hc = jnp.tanh(jnp.dot(feats, w_lin_ref[...],
                          preferred_element_type=f32) + b_lin_ref[...])    # [B, 2H]
    h0 = hc[:, :H]
    c0 = hc[:, H:]

    # Layer-0 input projection, batched over the whole sequence:
    #   token part: ONE [T*B, 5] @ [5, 4H] matmul, stored time-major in gates_buf
    #   feature part: ONE [B, F] @ [F, 4H] matmul, constant over time.
    feat_g = jnp.dot(feats, w_ih0_feat_ref[...],
                     preferred_element_type=f32)                           # [B, 4H]
    gates_buf[...] = jnp.dot(tok_ref[...], w_ih0_tok_ref[...],
                             preferred_element_type=f32)                   # [T*B, 4H]
    # feature contribution + (b_ih + b_hh) for layer 0, hoisted out of the t loop.
    x_const0 = feat_g + b_all_ref[0]                                       # [B, 4H]

    # tanh-vs-sigmoid lane mask (g gate occupies lanes [2H, 3H)), hoisted.
    lane = jax.lax.broadcasted_iota(jnp.int32, (B, 4 * H), 1)
    g_mask = jnp.logical_and(lane >= 2 * H, lane < 3 * H)

    for l in range(NL):
        if l > 0:
            # One batched input projection over the previous layer's whole output
            # slab; bias folded in once (not per timestep).
            prev = layer_buf[...]                                          # [T*B, H]
            gates_buf[...] = (jnp.dot(prev, w_ih_rest_ref[l - 1],
                                      preferred_element_type=f32)
                              + b_all_ref[l])                              # [T*B, 4H]
        w_hh_l = w_hh_ref[l]                                               # [H, 4H]
        h = h0
        c = c0
        for t in range(T):
            # Only the recurrent term stays on the per-step critical path.
            gates = (gates_buf[t * B:(t + 1) * B, :]
                     + jnp.dot(h, w_hh_l, preferred_element_type=f32))     # [B, 4H]
            if l == 0:
                gates = gates + x_const0
            # Full-vreg nonlinearity pass, then lane-group split.
            act = jnp.where(g_mask, jnp.tanh(gates), jax.nn.sigmoid(gates))
            i_g = act[:, 0:H]
            f_g = act[:, H:2 * H]
            g_g = act[:, 2 * H:3 * H]
            o_g = act[:, 3 * H:4 * H]
            c = f_g * c + i_g * g_g
            h = o_g * jnp.tanh(c)
            layer_buf[t * B:(t + 1) * B, :] = h                            # contiguous rows
        hiddens_ref[l] = h
        cells_ref[l] = c
        # TODO(synk): nn.LSTM inter-layer dropout is identity in eval mode; not applied.

    # Heads fused over the whole [T*B, H] slab: two matmuls total (instead of
    # 2*B tiny ones) and a single bulk store.
    flat = layer_buf[...]                                                  # [T*B, H]
    x_out = jnp.tanh(jnp.dot(flat, w_x_ref[...],
                             preferred_element_type=f32) + b_x_ref[...])   # [T*B, 2]
    logits = (jnp.dot(flat, w_c_ref[...], preferred_element_type=f32)
              + b_c_ref[...])                                              # [T*B, 3]
    logits = logits - jnp.max(logits, axis=1, keepdims=True)
    e = jnp.exp(logits)
    c_out = e / jnp.sum(e, axis=1, keepdims=True)
    out_ref[...] = jnp.concatenate([x_out, c_out], axis=1)                 # [T*B, 5]


# ------------------------------- wrapper -------------------------------------
def decoder_forward(features, labels, params, *, hidden_size, num_layers,
                    max_length, start_token):
    B, F = features.shape
    H = hidden_size
    T = max_length + 1

    features = features.astype(jnp.float32)
    labels = labels.astype(jnp.float32)

    # Token sequence only (no [B,T,F] feature replication), time-major [T*B, 5].
    start = jnp.broadcast_to(start_token.astype(jnp.float32)[None, None, :], (B, 1, 5))
    seq = jnp.concatenate([start, labels], axis=1)                         # [B, T, 5]
    tok2d = jnp.transpose(seq, (1, 0, 2)).reshape(T * B, 5)                # [T*B, 5]

    # Split / fold weights once in plain JAX (cheap, outside the kernel).
    w_ih = params['w_ih']
    w_ih0_feat = w_ih[0, :F, :]                                            # [F, 4H]
    w_ih0_tok = w_ih[0, F:F + 5, :]                                        # [5, 4H]
    if num_layers > 1:
        w_ih_rest = w_ih[1:, :H, :]                                        # [NL-1, H, 4H]
    else:
        w_ih_rest = jnp.zeros((1, H, 4 * H), jnp.float32)                  # unused dummy
    b_all = params['b_ih'] + params['b_hh']                                # [NL, 1, 4H]

    kern = functools.partial(decoder_kernel, B=B, H=H, T=T, NL=num_layers)
    vmem = pl.BlockSpec(memory_space=pltpu.MemorySpace.VMEM)
    out_shapes = (
        jax.ShapeDtypeStruct((T * B, 5), jnp.float32),
        jax.ShapeDtypeStruct((num_layers, B, H), jnp.float32),
        jax.ShapeDtypeStruct((num_layers, B, H), jnp.float32),
    )
    # TODO(synk): once B spans >=2 sublane tiles, add a batch grid with
    # dimension_semantics=("parallel",) to use both TensorCores on v7x.
    out2d, hiddens, cells = pl.pallas_call(
        kern,
        out_shape=out_shapes,
        in_specs=[vmem] * 13,
        out_specs=(vmem, vmem, vmem),
        scratch_shapes=[pltpu.VMEM((T * B, H), jnp.float32),
                        pltpu.VMEM((T * B, 4 * H), jnp.float32)],
        compiler_params=pltpu.CompilerParams(vmem_limit_bytes=32 * 1024 * 1024),
    )(features, tok2d,
      params['w_lin'], params['b_lin'],
      w_ih0_feat, w_ih0_tok, w_ih_rest,
      params['w_hh'], b_all,
      params['w_x'], params['b_x'], params['w_c'], params['b_c'])

    outputs = jnp.transpose(out2d.reshape(T, B, 5), (1, 0, 2))             # [B, T, 5]
    return outputs, (hiddens, cells)


# --------------------------- deterministic params ----------------------------
def init_params(key, feature_size, hidden_size, num_layers):
    F, H, NL = feature_size, hidden_size, num_layers
    FIN = F + 5
    IN_MAX = max(FIN, H)
    ks = jax.random.split(key, 10)
    u = lambda k, shape: jax.random.uniform(k, shape, jnp.float32, -0.1, 0.1)
    return dict(
        w_lin=u(ks[0], (F, 2 * H)), b_lin=u(ks[1], (1, 2 * H)),
        w_ih=u(ks[2], (NL, IN_MAX, 4 * H)), w_hh=u(ks[3], (NL, H, 4 * H)),
        b_ih=u(ks[4], (NL, 1, 4 * H)), b_hh=u(ks[5], (NL, 1, 4 * H)),
        w_x=u(ks[6], (H, 2)), b_x=u(ks[7], (1, 2)),
        w_c=u(ks[8], (H, 3)), b_c=u(ks[9], (1, 3)),
    )


# --------------------------- pure-JAX reference -------------------------------
def decoder_ref(features, labels, params, *, hidden_size, num_layers,
                max_length, start_token):
    B, F = features.shape
    H = hidden_size
    T = max_length + 1
    FIN = F + 5
    start = jnp.broadcast_to(start_token[None, None, :], (B, 1, 5))
    seq = jnp.concatenate([start, labels], axis=1)
    feats_rep = jnp.broadcast_to(features[:, None, :], (B, T, F))
    layer_input = jnp.concatenate([feats_rep, seq], axis=2)

    hc = jnp.tanh(features @ params['w_lin'] + params['b_lin'])
    h0, c0 = hc[:, :H], hc[:, H:]
    hiddens, cells = [], []
    for l in range(num_layers):
        in_dim = FIN if l == 0 else H
        w_ih = params['w_ih'][l][:in_dim]
        w_hh = params['w_hh'][l]
        b = params['b_ih'][l] + params['b_hh'][l]
        h, c = h0, c0
        outs = []
        for t in range(T):
            x_t = layer_input[:, t, :]
            gates = x_t @ w_ih + h @ w_hh + b
            i = jax.nn.sigmoid(gates[:, :H])
            f = jax.nn.sigmoid(gates[:, H:2 * H])
            g = jnp.tanh(gates[:, 2 * H:3 * H])
            o = jax.nn.sigmoid(gates[:, 3 * H:])
            c = f * c + i * g
            h = o * jnp.tanh(c)
            outs.append(h)
        layer_input = jnp.stack(outs, axis=1)
        hiddens.append(h)
        cells.append(c)
    flat = layer_input.reshape(B * T, H)
    x = jnp.tanh(flat @ params['w_x'] + params['b_x'])
    c = jax.nn.softmax(flat @ params['w_c'] + params['b_c'], axis=1)
    out = jnp.concatenate([x, c], axis=1).reshape(B, T, 5)
    return out, (jnp.stack(hiddens), jnp.stack(cells))


# ---------------------------------- main --------------------------------------
if __name__ == "__main__":
    # Small, shape-consistent hyperparams.
    feature_size, hidden_size, num_layers = 16, 32, 2
    max_length, batch = 8, 2
    # hp.start_token (5-dim, matching x(2) + one-hot c(3) output format).
    start_token = jnp.array([0.0, 0.0, 1.0, 0.0, 0.0], dtype=jnp.float32)

    key = jax.random.PRNGKey(0)
    k_feat, k_lab, k_par = jax.random.split(key, 3)
    features = jax.random.normal(k_feat, (batch, feature_size), jnp.float32)
    labels = jax.random.normal(k_lab, (batch, max_length, 5), jnp.float32)
    params = init_params(k_par, feature_size, hidden_size, num_layers)

    kwargs = dict(hidden_size=hidden_size, num_layers=num_layers,
                  max_length=max_length, start_token=start_token)

    outputs, (hiddens, cells) = decoder_forward(features, labels, params, **kwargs)
    jax.block_until_ready((outputs, hiddens, cells))

    ref_out, (ref_h, ref_c) = decoder_ref(features, labels, params, **kwargs)
    np.testing.assert_allclose(np.asarray(outputs), np.asarray(ref_out), rtol=1e-5, atol=1e-5)
    np.testing.assert_allclose(np.asarray(hiddens), np.asarray(ref_h), rtol=1e-5, atol=1e-5)
    np.testing.assert_allclose(np.asarray(cells), np.asarray(ref_c), rtol=1e-5, atol=1e-5)

    print("KERNEL_OK")
</pallas_src>

<mosaic_0001>
module attributes {stable_mosaic.version = 11 : i64} {
  func.func @decoder_kernel(%arg0: memref<2x16xf32, #tpu.memory_space<vmem>>, %arg1: memref<18x5xf32, #tpu.memory_space<vmem>>, %arg2: memref<16x64xf32, #tpu.memory_space<vmem>>, %arg3: memref<1x64xf32, #tpu.memory_space<vmem>>, %arg4: memref<16x128xf32, #tpu.memory_space<vmem>>, %arg5: memref<5x128xf32, #tpu.memory_space<vmem>>, %arg6: memref<1x32x128xf32, #tpu.memory_space<vmem>>, %arg7: memref<2x32x128xf32, #tpu.memory_space<vmem>>, %arg8: memref<2x1x128xf32, #tpu.memory_space<vmem>>, %arg9: memref<32x2xf32, #tpu.memory_space<vmem>>, %arg10: memref<1x2xf32, #tpu.memory_space<vmem>>, %arg11: memref<32x3xf32, #tpu.memory_space<vmem>>, %arg12: memref<1x3xf32, #tpu.memory_space<vmem>>, %arg13: memref<18x5xf32, #tpu.memory_space<vmem>>, %arg14: memref<2x2x32xf32, #tpu.memory_space<vmem>>, %arg15: memref<2x2x32xf32, #tpu.memory_space<vmem>>, %arg16: memref<18x32xf32, #tpu.memory_space<vmem>>, %arg17: memref<18x128xf32, #tpu.memory_space<vmem>>) attributes {dimension_semantics = [], scalar_prefetch = 0 : i64, scratch_operands = 2 : i64, tpu.core_type = #tpu.core_type<tc>} {
    %c0 = arith.constant 0 : index
    %c0_0 = arith.constant 0 : index
    %0 = vector.load %arg0[%c0, %c0_0] : memref<2x16xf32, #tpu.memory_space<vmem>>, vector<2x16xf32>
    %c0_1 = arith.constant 0 : index
    %c0_2 = arith.constant 0 : index
    %1 = vector.load %arg2[%c0_1, %c0_2] : memref<16x64xf32, #tpu.memory_space<vmem>>, vector<16x64xf32>
    %cst = arith.constant dense<0.000000e+00> : vector<2x64xf32>
    %2 = tpu.matmul %0, %1, %cst {dimension_numbers = #tpu.dot_dimension_numbers<[1], [0], [0], [1], [0, 0, 1, 1], [], []>} : vector<2x16xf32>, vector<16x64xf32>, vector<2x64xf32> -> vector<2x64xf32>
    %c0_3 = arith.constant 0 : index
    %c0_4 = arith.constant 0 : index
    %3 = vector.load %arg3[%c0_3, %c0_4] : memref<1x64xf32, #tpu.memory_space<vmem>>, vector<1x64xf32>
    %4 = vector.broadcast %3 : vector<1x64xf32> to vector<2x64xf32>
    %5 = arith.addf %2, %4 : vector<2x64xf32>
    %6 = math.tanh %5 : vector<2x64xf32>
    %7 = vector.extract_strided_slice %6 {offsets = [0, 0], sizes = [2, 32], strides = [1, 1]} : vector<2x64xf32> to vector<2x32xf32>
    %8 = vector.extract_strided_slice %6 {offsets = [0, 32], sizes = [2, 32], strides = [1, 1]} : vector<2x64xf32> to vector<2x32xf32>
    %c0_5 = arith.constant 0 : index
    %c0_6 = arith.constant 0 : index
    %9 = vector.load %arg4[%c0_5, %c0_6] : memref<16x128xf32, #tpu.memory_space<vmem>>, vector<16x128xf32>
    %cst_7 = arith.constant dense<0.000000e+00> : vector<2x128xf32>
    %10 = tpu.matmul %0, %9, %cst_7 {dimension_numbers = #tpu.dot_dimension_numbers<[1], [0], [0], [1], [0, 0, 1, 1], [], []>} : vector<2x16xf32>, vector<16x128xf32>, vector<2x128xf32> -> vector<2x128xf32>
    %c0_8 = arith.constant 0 : index
    %c0_9 = arith.constant 0 : index
    %11 = vector.load %arg1[%c0_8, %c0_9] : memref<18x5xf32, #tpu.memory_space<vmem>>, vector<18x5xf32>
    %c0_10 = arith.constant 0 : index
    %c0_11 = arith.constant 0 : index
    %12 = vector.load %arg5[%c0_10, %c0_11] : memref<5x128xf32, #tpu.memory_space<vmem>>, vector<5x128xf32>
    %cst_12 = arith.constant dense<0.000000e+00> : vector<18x128xf32>
    %13 = tpu.matmul %11, %12, %cst_12 {dimension_numbers = #tpu.dot_dimension_numbers<[1], [0], [0], [1], [0, 0, 1, 1], [], []>} : vector<18x5xf32>, vector<5x128xf32>, vector<18x128xf32> -> vector<18x128xf32>
    %c0_13 = arith.constant 0 : index
    %c0_14 = arith.constant 0 : index
    %14 = vector.load %arg17[%c0_13, %c0_14] : memref<18x128xf32, #tpu.memory_space<vmem>>, vector<18x128xf32>
    tpu.vector_store %arg17[%c0_13, %c0_14], %13 {strides = array<i32>} : memref<18x128xf32, #tpu.memory_space<vmem>>, vector<18x128xf32>,
    %c0_15 = arith.constant 0 : index
    %c0_16 = arith.constant 0 : index
    %c0_17 = arith.constant 0 : index
    %15 = vector.load %arg8[%c0_15, %c0_16, %c0_17] : memref<2x1x128xf32, #tpu.memory_space<vmem>>, vector<1x1x128xf32>
    %16 = vector.shape_cast %15 : vector<1x1x128xf32> to vector<1x128xf32>
    %17 = vector.broadcast %16 : vector<1x128xf32> to vector<2x128xf32>
    %18 = arith.addf %10, %17 : vector<2x128xf32>
    %19 = tpu.iota {dimensions = array<i32: 1>} : vector<2x128xi32>
    %c64_i32 = arith.constant 64 : i32
    %20 = vector.broadcast %c64_i32 : i32 to vector<2x128xi32>
    %21 = arith.cmpi sge, %19, %20 : vector<2x128xi32>
    %c96_i32 = arith.constant 96 : i32
    %22 = vector.broadcast %c96_i32 : i32 to vector<2x128xi32>
    %23 = arith.cmpi slt, %19, %22 : vector<2x128xi32>
    %24 = arith.andi %21, %23 : vector<2x128xi1>
    %c0_18 = arith.constant 0 : index
    %c0_19 = arith.constant 0 : index
    %c0_20 = arith.constant 0 : index
    %25 = vector.load %arg7[%c0_18, %c0_19, %c0_20] : memref<2x32x128xf32, #tpu.memory_space<vmem>>, vector<1x32x128xf32>
    %26 = vector.shape_cast %25 : vector<1x32x128xf32> to vector<32x128xf32>
    %c0_21 = arith.constant 0 : index
    %c0_22 = arith.constant 0 : index
    %27 = vector.load %arg17[%c0_21, %c0_22] : memref<18x128xf32, #tpu.memory_space<vmem>>, vector<2x128xf32>
    %cst_23 = arith.constant dense<0.000000e+00> : vector<2x128xf32>
    %28 = tpu.matmul %7, %26, %cst_23 {dimension_numbers = #tpu.dot_dimension_numbers<[1], [0], [0], [1], [0, 0, 1, 1], [], []>} : vector<2x32xf32>, vector<32x128xf32>, vector<2x128xf32> -> vector<2x128xf32>
    %29 = arith.addf %27, %28 : vector<2x128xf32>
    %30 = arith.addf %29, %18 : vector<2x128xf32>
    %31 = math.tanh %30 : vector<2x128xf32>
    %32 = arith.negf %30 : vector<2x128xf32>
    %33 = math.exp %32 : vector<2x128xf32>
    %cst_24 = arith.constant 1.000000e+00 : f32
    %34 = vector.broadcast %cst_24 : f32 to vector<2x128xf32>
    %35 = arith.addf %34, %33 : vector<2x128xf32>
    %36 = arith.divf %34, %35 : vector<2x128xf32>
    %37 = arith.select %24, %31, %36 : vector<2x128xi1>, vector<2x128xf32>
    %38 = vector.extract_strided_slice %37 {offsets = [0, 0], sizes = [2, 32], strides = [1, 1]} : vector<2x128xf32> to vector<2x32xf32>
    %39 = vector.extract_strided_slice %37 {offsets = [0, 32], sizes = [2, 32], strides = [1, 1]} : vector<2x128xf32> to vector<2x32xf32>
    %40 = vector.extract_strided_slice %37 {offsets = [0, 64], sizes = [2, 32], strides = [1, 1]} : vector<2x128xf32> to vector<2x32xf32>
    %41 = vector.extract_strided_slice %37 {offsets = [0, 96], sizes = [2, 32], strides = [1, 1]} : vector<2x128xf32> to vector<2x32xf32>
    %42 = arith.mulf %39, %8 : vector<2x32xf32>
    %43 = arith.mulf %38, %40 : vector<2x32xf32>
    %44 = arith.addf %42, %43 : vector<2x32xf32>
    %45 = math.tanh %44 : vector<2x32xf32>
    %46 = arith.mulf %41, %45 : vector<2x32xf32>
    %c0_25 = arith.constant 0 : index
    %c0_26 = arith.constant 0 : index
    %47 = vector.load %arg16[%c0_25, %c0_26] : memref<18x32xf32, #tpu.memory_space<vmem>>, vector<2x32xf32>
    tpu.vector_store %arg16[%c0_25, %c0_26], %46 {strides = array<i32>} : memref<18x32xf32, #tpu.memory_space<vmem>>, vector<2x32xf32>,
    %c2 = arith.constant 2 : index
    %c0_27 = arith.constant 0 : index
    %48 = vector.load %arg17[%c2, %c0_27] : memref<18x128xf32, #tpu.memory_space<vmem>>, vector<2x128xf32>
    %cst_28 = arith.constant dense<0.000000e+00> : vector<2x128xf32>
    %49 = tpu.matmul %46, %26, %cst_28 {dimension_numbers = #tpu.dot_dimension_numbers<[1], [0], [0], [1], [0, 0, 1, 1], [], []>} : vector<2x32xf32>, vector<32x128xf32>, vector<2x128xf32> -> vector<2x128xf32>
    %50 = arith.addf %48, %49 : vector<2x128xf32>
    %51 = arith.addf %50, %18 : vector<2x128xf32>
    %52 = math.tanh %51 : vector<2x128xf32>
    %53 = arith.negf %51 : vector<2x128xf32>
    %54 = math.exp %53 : vector<2x128xf32>
    %cst_29 = arith.constant 1.000000e+00 : f32
    %55 = vector.broadcast %cst_29 : f32 to vector<2x128xf32>
    %56 = arith.addf %55, %54 : vector<2x128xf32>
    %57 = arith.divf %55, %56 : vector<2x128xf32>
    %58 = arith.select %24, %52, %57 : vector<2x128xi1>, vector<2x128xf32>
    %59 = vector.extract_strided_slice %58 {offsets = [0, 0], sizes = [2, 32], strides = [1, 1]} : vector<2x128xf32> to vector<2x32xf32>
    %60 = vector.extract_strided_slice %58 {offsets = [0, 32], sizes = [2, 32], strides = [1, 1]} : vector<2x128xf32> to vector<2x32xf32>
    %61 = vector.extract_strided_slice %58 {offsets = [0, 64], sizes = [2, 32], strides = [1, 1]} : vector<2x128xf32> to vector<2x32xf32>
    %62 = vector.extract_strided_slice %58 {offsets = [0, 96], sizes = [2, 32], strides = [1, 1]} : vector<2x128xf32> to vector<2x32xf32>
    %63 = arith.mulf %60, %44 : vector<2x32xf32>
    %64 = arith.mulf %59, %61 : vector<2x32xf32>
    %65 = arith.addf %63, %64 : vector<2x32xf32>
    %66 = math.tanh %65 : vector<2x32xf32>
    %67 = arith.mulf %62, %66 : vector<2x32xf32>
    %c2_30 = arith.constant 2 : index
    %c0_31 = arith.constant 0 : index
    %68 = vector.load %arg16[%c2_30, %c0_31] : memref<18x32xf32, #tpu.memory_space<vmem>>, vector<2x32xf32>
    tpu.vector_store %arg16[%c2_30, %c0_31], %67 {strides = array<i32>} : memref<18x32xf32, #tpu.memory_space<vmem>>, vector<2x32xf32>,
    %c4 = arith.constant 4 : index
    %c0_32 = arith.constant 0 : index
    %69 = vector.load %arg17[%c4, %c0_32] : memref<18x128xf32, #tpu.memory_space<vmem>>, vector<2x128xf32>
    %cst_33 = arith.constant dense<0.000000e+00> : vector<2x128xf32>
    %70 = tpu.matmul %67, %26, %cst_33 {dimension_numbers = #tpu.dot_dimension_numbers<[1], [0], [0], [1], [0, 0, 1, 1], [], []>} : vector<2x32xf32>, vector<32x128xf32>, vector<2x128xf32> -> vector<2x128xf32>
    %71 = arith.addf %69, %70 : vector<2x128xf32>
    %72 = arith.addf %71, %18 : vector<2x128xf32>
    %73 = math.tanh %72 : vector<2x128xf32>
    %74 = arith.negf %72 : vector<2x128xf32>
    %75 = math.exp %74 : vector<2x128xf32>
    %cst_34 = arith.constant 1.000000e+00 : f32
    %76 = vector.broadcast %cst_34 : f32 to vector<2x128xf32>
    %77 = arith.addf %76, %75 : vector<2x128xf32>
    %78 = arith.divf %76, %77 : vector<2x128xf32>
    %79 = arith.select %24, %73, %78 : vector<2x128xi1>, vector<2x128xf32>
    %80 = vector.extract_strided_slice %79 {offsets = [0, 0], sizes = [2, 32], strides = [1, 1]} : vector<2x128xf32> to vector<2x32xf32>
    %81 = vector.extract_strided_slice %79 {offsets = [0, 32], sizes = [2, 32], strides = [1, 1]} : vector<2x128xf32> to vector<2x32xf32>
    %82 = vector.extract_strided_slice %79 {offsets = [0, 64], sizes = [2, 32], strides = [1, 1]} : vector<2x128xf32> to vector<2x32xf32>
    %83 = vector.extract_strided_slice %79 {offsets = [0, 96], sizes = [2, 32], strides = [1, 1]} : vector<2x128xf32> to vector<2x32xf32>
    %84 = arith.mulf %81, %65 : vector<2x32xf32>
    %85 = arith.mulf %80, %82 : vector<2x32xf32>
    %86 = arith.addf %84, %85 : vector<2x32xf32>
    %87 = math.tanh %86 : vector<2x32xf32>
    %88 = arith.mulf %83, %87 : vector<2x32xf32>
    %c4_35 = arith.constant 4 : index
    %c0_36 = arith.constant 0 : index
    %89 = vector.load %arg16[%c4_35, %c0_36] : memref<18x32xf32, #tpu.memory_space<vmem>>, vector<2x32xf32>
    tpu.vector_store %arg16[%c4_35, %c0_36], %88 {strides = array<i32>} : memref<18x32xf32, #tpu.memory_space<vmem>>, vector<2x32xf32>,
    %c6 = arith.constant 6 : index
    %c0_37 = arith.constant 0 : index
    %90 = vector.load %arg17[%c6, %c0_37] : memref<18x128xf32, #tpu.memory_space<vmem>>, vector<2x128xf32>
    %cst_38 = arith.constant dense<0.000000e+00> : vector<2x128xf32>
    %91 = tpu.matmul %88, %26, %cst_38 {dimension_numbers = #tpu.dot_dimension_numbers<[1], [0], [0], [1], [0, 0, 1, 1], [], []>} : vector<2x32xf32>, vector<32x128xf32>, vector<2x128xf32> -> vector<2x128xf32>
    %92 = arith.addf %90, %91 : vector<2x128xf32>
    %93 = arith.addf %92, %18 : vector<2x128xf32>
    %94 = math.tanh %93 : vector<2x128xf32>
    %95 = arith.negf %93 : vector<2x128xf32>
    %96 = math.exp %95 : vector<2x128xf32>
    %cst_39 = arith.constant 1.000000e+00 : f32
    %97 = vector.broadcast %cst_39 : f32 to vector<2x128xf32>
    %98 = arith.addf %97, %96 : vector<2x128xf32>
    %99 = arith.divf %97, %98 : vector<2x128xf32>
    %100 = arith.select %24, %94, %99 : vector<2x128xi1>, vector<2x128xf32>
    %101 = vector.extract_strided_slice %100 {offsets = [0, 0], sizes = [2, 32], strides = [1, 1]} : vector<2x128xf32> to vector<2x32xf32>
    %102 = vector.extract_strided_slice %100 {offsets = [0, 32], sizes = [2, 32], strides = [1, 1]} : vector<2x128xf32> to vector<2x32xf32>
    %103 = vector.extract_strided_slice %100 {offsets = [0, 64], sizes = [2, 32], strides = [1, 1]} : vector<2x128xf32> to vector<2x32xf32>
    %104 = vector.extract_strided_slice %100 {offsets = [0, 96], sizes = [2, 32], strides = [1, 1]} : vector<2x128xf32> to vector<2x32xf32>
    %105 = arith.mulf %102, %86 : vector<2x32xf32>
    %106 = arith.mulf %101, %103 : vector<2x32xf32>
    %107 = arith.addf %105, %106 : vector<2x32xf32>
    %108 = math.tanh %107 : vector<2x32xf32>
    %109 = arith.mulf %104, %108 : vector<2x32xf32>
    %c6_40 = arith.constant 6 : index
    %c0_41 = arith.constant 0 : index
    %110 = vector.load %arg16[%c6_40, %c0_41] : memref<18x32xf32, #tpu.memory_space<vmem>>, vector<2x32xf32>
    tpu.vector_store %arg16[%c6_40, %c0_41], %109 {strides = array<i32>} : memref<18x32xf32, #tpu.memory_space<vmem>>, vector<2x32xf32>,
    %c8 = arith.constant 8 : index
    %c0_42 = arith.constant 0 : index
    %111 = vector.load %arg17[%c8, %c0_42] : memref<18x128xf32, #tpu.memory_space<vmem>>, vector<2x128xf32>
    %cst_43 = arith.constant dense<0.000000e+00> : vector<2x128xf32>
    %112 = tpu.matmul %109, %26, %cst_43 {dimension_numbers = #tpu.dot_dimension_numbers<[1], [0], [0], [1], [0, 0, 1, 1], [], []>} : vector<2x32xf32>, vector<32x128xf32>, vector<2x128xf32> -> vector<2x128xf32>
    %113 = arith.addf %111, %112 : vector<2x128xf32>
    %114 = arith.addf %113, %18 : vector<2x128xf32>
    %115 = math.tanh %114 : vector<2x128xf32>
    %116 = arith.negf %114 : vector<2x128xf32>
    %117 = math.exp %116 : vector<2x128xf32>
    %cst_44 = arith.constant 1.000000e+00 : f32
    %118 = vector.broadcast %cst_44 : f32 to vector<2x128xf32>
    %119 = arith.addf %118, %117 : vector<2x128xf32>
    %120 = arith.divf %118, %119 : vector<2x128xf32>
    %121 = arith.select %24, %115, %120 : vector<2x128xi1>, vector<2x128xf32>
    %122 = vector.extract_strided_slice %121 {offsets = [0, 0], sizes = [2, 32], strides = [1, 1]} : vector<2x128xf32> to vector<2x32xf32>
    %123 = vector.extract_strided_slice %121 {offsets = [0, 32], sizes = [2, 32], strides = [1, 1]} : vector<2x128xf32> to vector<2x32xf32>
    %124 = vector.extract_strided_slice %121 {offsets = [0, 64], sizes = [2, 32], strides = [1, 1]} : vector<2x128xf32> to vector<2x32xf32>
    %125 = vector.extract_strided_slice %121 {offsets = [0, 96], sizes = [2, 32], strides = [1, 1]} : vector<2x128xf32> to vector<2x32xf32>
    %126 = arith.mulf %123, %107 : vector<2x32xf32>
    %127 = arith.mulf %122, %124 : vector<2x32xf32>
    %128 = arith.addf %126, %127 : vector<2x32xf32>
    %129 = math.tanh %128 : vector<2x32xf32>
    %130 = arith.mulf %125, %129 : vector<2x32xf32>
    %c8_45 = arith.constant 8 : index
    %c0_46 = arith.constant 0 : index
    %131 = vector.load %arg16[%c8_45, %c0_46] : memref<18x32xf32, #tpu.memory_space<vmem>>, vector<2x32xf32>
    tpu.vector_store %arg16[%c8_45, %c0_46], %130 {strides = array<i32>} : memref<18x32xf32, #tpu.memory_space<vmem>>, vector<2x32xf32>,
    %c10 = arith.constant 10 : index
    %c0_47 = arith.constant 0 : index
    %132 = vector.load %arg17[%c10, %c0_47] : memref<18x128xf32, #tpu.memory_space<vmem>>, vector<2x128xf32>
    %cst_48 = arith.constant dense<0.000000e+00> : vector<2x128xf32>
    %133 = tpu.matmul %130, %26, %cst_48 {dimension_numbers = #tpu.dot_dimension_numbers<[1], [0], [0], [1], [0, 0, 1, 1], [], []>} : vector<2x32xf32>, vector<32x128xf32>, vector<2x128xf32> -> vector<2x128xf32>
    %134 = arith.addf %132, %133 : vector<2x128xf32>
    %135 = arith.addf %134, %18 : vector<2x128xf32>
    %136 = math.tanh %135 : vector<2x128xf32>
    %137 = arith.negf %135 : vector<2x128xf32>
    %138 = math.exp %137 : vector<2x128xf32>
    %cst_49 = arith.constant 1.000000e+00 : f32
    %139 = vector.broadcast %cst_49 : f32 to vector<2x128xf32>
    %140 = arith.addf %139, %138 : vector<2x128xf32>
    %141 = arith.divf %139, %140 : vector<2x128xf32>
    %142 = arith.select %24, %136, %141 : vector<2x128xi1>, vector<2x128xf32>
    %143 = vector.extract_strided_slice %142 {offsets = [0, 0], sizes = [2, 32], strides = [1, 1]} : vector<2x128xf32> to vector<2x32xf32>
    %144 = vector.extract_strided_slice %142 {offsets = [0, 32], sizes = [2, 32], strides = [1, 1]} : vector<2x128xf32> to vector<2x32xf32>
    %145 = vector.extract_strided_slice %142 {offsets = [0, 64], sizes = [2, 32], strides = [1, 1]} : vector<2x128xf32> to vector<2x32xf32>
    %146 = vector.extract_strided_slice %142 {offsets = [0, 96], sizes = [2, 32], strides = [1, 1]} : vector<2x128xf32> to vector<2x32xf32>
    %147 = arith.mulf %144, %128 : vector<2x32xf32>
    %148 = arith.mulf %143, %145 : vector<2x32xf32>
    %149 = arith.addf %147, %148 : vector<2x32xf32>
    %150 = math.tanh %149 : vector<2x32xf32>
    %151 = arith.mulf %146, %150 : vector<2x32xf32>
    %c10_50 = arith.constant 10 : index
    %c0_51 = arith.constant 0 : index
    %152 = vector.load %arg16[%c10_50, %c0_51] : memref<18x32xf32, #tpu.memory_space<vmem>>, vector<2x32xf32>
    tpu.vector_store %arg16[%c10_50, %c0_51], %151 {strides = array<i32>} : memref<18x32xf32, #tpu.memory_space<vmem>>, vector<2x32xf32>,
    %c12 = arith.constant 12 : index
    %c0_52 = arith.constant 0 : index
    %153 = vector.load %arg17[%c12, %c0_52] : memref<18x128xf32, #tpu.memory_space<vmem>>, vector<2x128xf32>
    %cst_53 = arith.constant dense<0.000000e+00> : vector<2x128xf32>
    %154 = tpu.matmul %151, %26, %cst_53 {dimension_numbers = #tpu.dot_dimension_numbers<[1], [0], [0], [1], [0, 0, 1, 1], [], []>} : vector<2x32xf32>, vector<32x128xf32>, vector<2x128xf32> -> vector<2x128xf32>
    %155 = arith.addf %153, %154 : vector<2x128xf32>
    %156 = arith.addf %155, %18 : vector<2x128xf32>
    %157 = math.tanh %156 : vector<2x128xf32>
    %158 = arith.negf %156 : vector<2x128xf32>
    %159 = math.exp %158 : vector<2x128xf32>
    %cst_54 = arith.constant 1.000000e+00 : f32
    %160 = vector.broadcast %cst_54 : f32 to vector<2x128xf32>
    %161 = arith.addf %160, %159 : vector<2x128xf32>
    %162 = arith.divf %160, %161 : vector<2x128xf32>
    %163 = arith.select %24, %157, %162 : vector<2x128xi1>, vector<2x128xf32>
    %164 = vector.extract_strided_slice %163 {offsets = [0, 0], sizes = [2, 32], strides = [1, 1]} : vector<2x128xf32> to vector<2x32xf32>
    %165 = vector.extract_strided_slice %163 {offsets = [0, 32], sizes = [2, 32], strides = [1, 1]} : vector<2x128xf32> to vector<2x32xf32>
    %166 = vector.extract_strided_slice %163 {offsets = [0, 64], sizes = [2, 32], strides = [1, 1]} : vector<2x128xf32> to vector<2x32xf32>
    %167 = vector.extract_strided_slice %163 {offsets = [0, 96], sizes = [2, 32], strides = [1, 1]} : vector<2x128xf32> to vector<2x32xf32>
    %168 = arith.mulf %165, %149 : vector<2x32xf32>
    %169 = arith.mulf %164, %166 : vector<2x32xf32>
    %170 = arith.addf %168, %169 : vector<2x32xf32>
    %171 = math.tanh %170 : vector<2x32xf32>
    %172 = arith.mulf %167, %171 : vector<2x32xf32>
    %c12_55 = arith.constant 12 : index
    %c0_56 = arith.constant 0 : index
    %173 = vector.load %arg16[%c12_55, %c0_56] : memref<18x32xf32, #tpu.memory_space<vmem>>, vector<2x32xf32>
    tpu.vector_store %arg16[%c12_55, %c0_56], %172 {strides = array<i32>} : memref<18x32xf32, #tpu.memory_space<vmem>>, vector<2x32xf32>,
    %c14 = arith.constant 14 : index
    %c0_57 = arith.constant 0 : index
    %174 = vector.load %arg17[%c14, %c0_57] : memref<18x128xf32, #tpu.memory_space<vmem>>, vector<2x128xf32>
    %cst_58 = arith.constant dense<0.000000e+00> : vector<2x128xf32>
    %175 = tpu.matmul %172, %26, %cst_58 {dimension_numbers = #tpu.dot_dimension_numbers<[1], [0], [0], [1], [0, 0, 1, 1], [], []>} : vector<2x32xf32>, vector<32x128xf32>, vector<2x128xf32> -> vector<2x128xf32>
    %176 = arith.addf %174, %175 : vector<2x128xf32>
    %177 = arith.addf %176, %18 : vector<2x128xf32>
    %178 = math.tanh %177 : vector<2x128xf32>
    %179 = arith.negf %177 : vector<2x128xf32>
    %180 = math.exp %179 : vector<2x128xf32>
    %cst_59 = arith.constant 1.000000e+00 : f32
    %181 = vector.broadcast %cst_59 : f32 to vector<2x128xf32>
    %182 = arith.addf %181, %180 : vector<2x128xf32>
    %183 = arith.divf %181, %182 : vector<2x128xf32>
    %184 = arith.select %24, %178, %183 : vector<2x128xi1>, vector<2x128xf32>
    %185 = vector.extract_strided_slice %184 {offsets = [0, 0], sizes = [2, 32], strides = [1, 1]} : vector<2x128xf32> to vector<2x32xf32>
    %186 = vector.extract_strided_slice %184 {offsets = [0, 32], sizes = [2, 32], strides = [1, 1]} : vector<2x128xf32> to vector<2x32xf32>
    %187 = vector.extract_strided_slice %184 {offsets = [0, 64], sizes = [2, 32], strides = [1, 1]} : vector<2x128xf32> to vector<2x32xf32>
    %188 = vector.extract_strided_slice %184 {offsets = [0, 96], sizes = [2, 32], strides = [1, 1]} : vector<2x128xf32> to vector<2x32xf32>
    %189 = arith.mulf %186, %170 : vector<2x32xf32>
    %190 = arith.mulf %185, %187 : vector<2x32xf32>
    %191 = arith.addf %189, %190 : vector<2x32xf32>
    %192 = math.tanh %191 : vector<2x32xf32>
    %193 = arith.mulf %188, %192 : vector<2x32xf32>
    %c14_60 = arith.constant 14 : index
    %c0_61 = arith.constant 0 : index
    %194 = vector.load %arg16[%c14_60, %c0_61] : memref<18x32xf32, #tpu.memory_space<vmem>>, vector<2x32xf32>
    tpu.vector_store %arg16[%c14_60, %c0_61], %193 {strides = array<i32>} : memref<18x32xf32, #tpu.memory_space<vmem>>, vector<2x32xf32>,
    %c16 = arith.constant 16 : index
    %c0_62 = arith.constant 0 : index
    %195 = vector.load %arg17[%c16, %c0_62] : memref<18x128xf32, #tpu.memory_space<vmem>>, vector<2x128xf32>
    %cst_63 = arith.constant dense<0.000000e+00> : vector<2x128xf32>
    %196 = tpu.matmul %193, %26, %cst_63 {dimension_numbers = #tpu.dot_dimension_numbers<[1], [0], [0], [1], [0, 0, 1, 1], [], []>} : vector<2x32xf32>, vector<32x128xf32>, vector<2x128xf32> -> vector<2x128xf32>
    %197 = arith.addf %195, %196 : vector<2x128xf32>
    %198 = arith.addf %197, %18 : vector<2x128xf32>
    %199 = math.tanh %198 : vector<2x128xf32>
    %200 = arith.negf %198 : vector<2x128xf32>
    %201 = math.exp %200 : vector<2x128xf32>
    %cst_64 = arith.constant 1.000000e+00 : f32
    %202 = vector.broadcast %cst_64 : f32 to vector<2x128xf32>
    %203 = arith.addf %202, %201 : vector<2x128xf32>
    %204 = arith.divf %202, %203 : vector<2x128xf32>
    %205 = arith.select %24, %199, %204 : vector<2x128xi1>, vector<2x128xf32>
    %206 = vector.extract_strided_slice %205 {offsets = [0, 0], sizes = [2, 32], strides = [1, 1]} : vector<2x128xf32> to vector<2x32xf32>
    %207 = vector.extract_strided_slice %205 {offsets = [0, 32], sizes = [2, 32], strides = [1, 1]} : vector<2x128xf32> to vector<2x32xf32>
    %208 = vector.extract_strided_slice %205 {offsets = [0, 64], sizes = [2, 32], strides = [1, 1]} : vector<2x128xf32> to vector<2x32xf32>
    %209 = vector.extract_strided_slice %205 {offsets = [0, 96], sizes = [2, 32], strides = [1, 1]} : vector<2x128xf32> to vector<2x32xf32>
    %210 = arith.mulf %207, %191 : vector<2x32xf32>
    %211 = arith.mulf %206, %208 : vector<2x32xf32>
    %212 = arith.addf %210, %211 : vector<2x32xf32>
    %213 = math.tanh %212 : vector<2x32xf32>
    %214 = arith.mulf %209, %213 : vector<2x32xf32>
    %c16_65 = arith.constant 16 : index
    %c0_66 = arith.constant 0 : index
    %215 = vector.load %arg16[%c16_65, %c0_66] : memref<18x32xf32, #tpu.memory_space<vmem>>, vector<2x32xf32>
    tpu.vector_store %arg16[%c16_65, %c0_66], %214 {strides = array<i32>} : memref<18x32xf32, #tpu.memory_space<vmem>>, vector<2x32xf32>,
    %c0_67 = arith.constant 0 : index
    %c0_68 = arith.constant 0 : index
    %c0_69 = arith.constant 0 : index
    %216 = vector.load %arg14[%c0_67, %c0_68, %c0_69] : memref<2x2x32xf32, #tpu.memory_space<vmem>>, vector<1x2x32xf32>
    %217 = vector.shape_cast %216 : vector<1x2x32xf32> to vector<2x32xf32>
    %218 = vector.shape_cast %214 : vector<2x32xf32> to vector<1x2x32xf32>
    tpu.vector_store %arg14[%c0_67, %c0_68, %c0_69], %218 {strides = array<i32>} : memref<2x2x32xf32, #tpu.memory_space<vmem>>, vector<1x2x32xf32>,
    %c0_70 = arith.constant 0 : index
    %c0_71 = arith.constant 0 : index
    %c0_72 = arith.constant 0 : index
    %219 = vector.load %arg15[%c0_70, %c0_71, %c0_72] : memref<2x2x32xf32, #tpu.memory_space<vmem>>, vector<1x2x32xf32>
    %220 = vector.shape_cast %219 : vector<1x2x32xf32> to vector<2x32xf32>
    %221 = vector.shape_cast %212 : vector<2x32xf32> to vector<1x2x32xf32>
    tpu.vector_store %arg15[%c0_70, %c0_71, %c0_72], %221 {strides = array<i32>} : memref<2x2x32xf32, #tpu.memory_space<vmem>>, vector<1x2x32xf32>,
    %c0_73 = arith.constant 0 : index
    %c0_74 = arith.constant 0 : index
    %222 = vector.load %arg16[%c0_73, %c0_74] : memref<18x32xf32, #tpu.memory_space<vmem>>, vector<18x32xf32>
    %c0_75 = arith.constant 0 : index
    %c0_76 = arith.constant 0 : index
    %c0_77 = arith.constant 0 : index
    %223 = vector.load %arg6[%c0_75, %c0_76, %c0_77] : memref<1x32x128xf32, #tpu.memory_space<vmem>>, vector<1x32x128xf32>
    %224 = vector.shape_cast %223 : vector<1x32x128xf32> to vector<32x128xf32>
    %cst_78 = arith.constant dense<0.000000e+00> : vector<18x128xf32>
    %225 = tpu.matmul %222, %224, %cst_78 {dimension_numbers = #tpu.dot_dimension_numbers<[1], [0], [0], [1], [0, 0, 1, 1], [], []>} : vector<18x32xf32>, vector<32x128xf32>, vector<18x128xf32> -> vector<18x128xf32>
    %c1 = arith.constant 1 : index
    %c0_79 = arith.constant 0 : index
    %c0_80 = arith.constant 0 : index
    %226 = vector.load %arg8[%c1, %c0_79, %c0_80] : memref<2x1x128xf32, #tpu.memory_space<vmem>>, vector<1x1x128xf32>
    %227 = vector.shape_cast %226 : vector<1x1x128xf32> to vector<1x128xf32>
    %228 = vector.broadcast %227 : vector<1x128xf32> to vector<18x128xf32>
    %229 = arith.addf %225, %228 : vector<18x128xf32>
    %c0_81 = arith.constant 0 : index
    %c0_82 = arith.constant 0 : index
    %230 = vector.load %arg17[%c0_81, %c0_82] : memref<18x128xf32, #tpu.memory_space<vmem>>, vector<18x128xf32>
    tpu.vector_store %arg17[%c0_81, %c0_82], %229 {strides = array<i32>} : memref<18x128xf32, #tpu.memory_space<vmem>>, vector<18x128xf32>,
    %c1_83 = arith.constant 1 : index
    %c0_84 = arith.constant 0 : index
    %c0_85 = arith.constant 0 : index
    %231 = vector.load %arg7[%c1_83, %c0_84, %c0_85] : memref<2x32x128xf32, #tpu.memory_space<vmem>>, vector<1x32x128xf32>
    %232 = vector.shape_cast %231 : vector<1x32x128xf32> to vector<32x128xf32>
    %c0_86 = arith.constant 0 : index
    %c0_87 = arith.constant 0 : index
    %233 = vector.load %arg17[%c0_86, %c0_87] : memref<18x128xf32, #tpu.memory_space<vmem>>, vector<2x128xf32>
    %cst_88 = arith.constant dense<0.000000e+00> : vector<2x128xf32>
    %234 = tpu.matmul %7, %232, %cst_88 {dimension_numbers = #tpu.dot_dimension_numbers<[1], [0], [0], [1], [0, 0, 1, 1], [], []>} : vector<2x32xf32>, vector<32x128xf32>, vector<2x128xf32> -> vector<2x128xf32>
    %235 = arith.addf %233, %234 : vector<2x128xf32>
    %236 = math.tanh %235 : vector<2x128xf32>
    %237 = arith.negf %235 : vector<2x128xf32>
    %238 = math.exp %237 : vector<2x128xf32>
    %cst_89 = arith.constant 1.000000e+00 : f32
    %239 = vector.broadcast %cst_89 : f32 to vector<2x128xf32>
    %240 = arith.addf %239, %238 : vector<2x128xf32>
    %241 = arith.divf %239, %240 : vector<2x128xf32>
    %242 = arith.select %24, %236, %241 : vector<2x128xi1>, vector<2x128xf32>
    %243 = vector.extract_strided_slice %242 {offsets = [0, 0], sizes = [2, 32], strides = [1, 1]} : vector<2x128xf32> to vector<2x32xf32>
    %244 = vector.extract_strided_slice %242 {offsets = [0, 32], sizes = [2, 32], strides = [1, 1]} : vector<2x128xf32> to vector<2x32xf32>
    %245 = vector.extract_strided_slice %242 {offsets = [0, 64], sizes = [2, 32], strides = [1, 1]} : vector<2x128xf32> to vector<2x32xf32>
    %246 = vector.extract_strided_slice %242 {offsets = [0, 96], sizes = [2, 32], strides = [1, 1]} : vector<2x128xf32> to vector<2x32xf32>
    %247 = arith.mulf %244, %8 : vector<2x32xf32>
    %248 = arith.mulf %243, %245 : vector<2x32xf32>
    %249 = arith.addf %247, %248 : vector<2x32xf32>
    %250 = math.tanh %249 : vector<2x32xf32>
    %251 = arith.mulf %246, %250 : vector<2x32xf32>
    %c0_90 = arith.constant 0 : index
    %c0_91 = arith.constant 0 : index
    %252 = vector.load %arg16[%c0_90, %c0_91] : memref<18x32xf32, #tpu.memory_space<vmem>>, vector<2x32xf32>
    tpu.vector_store %arg16[%c0_90, %c0_91], %251 {strides = array<i32>} : memref<18x32xf32, #tpu.memory_space<vmem>>, vector<2x32xf32>,
    %c2_92 = arith.constant 2 : index
    %c0_93 = arith.constant 0 : index
    %253 = vector.load %arg17[%c2_92, %c0_93] : memref<18x128xf32, #tpu.memory_space<vmem>>, vector<2x128xf32>
    %cst_94 = arith.constant dense<0.000000e+00> : vector<2x128xf32>
    %254 = tpu.matmul %251, %232, %cst_94 {dimension_numbers = #tpu.dot_dimension_numbers<[1], [0], [0], [1], [0, 0, 1, 1], [], []>} : vector<2x32xf32>, vector<32x128xf32>, vector<2x128xf32> -> vector<2x128xf32>
    %255 = arith.addf %253, %254 : vector<2x128xf32>
    %256 = math.tanh %255 : vector<2x128xf32>
    %257 = arith.negf %255 : vector<2x128xf32>
    %258 = math.exp %257 : vector<2x128xf32>
    %cst_95 = arith.constant 1.000000e+00 : f32
    %259 = vector.broadcast %cst_95 : f32 to vector<2x128xf32>
    %260 = arith.addf %259, %258 : vector<2x128xf32>
    %261 = arith.divf %259, %260 : vector<2x128xf32>
    %262 = arith.select %24, %256, %261 : vector<2x128xi1>, vector<2x128xf32>
    %263 = vector.extract_strided_slice %262 {offsets = [0, 0], sizes = [2, 32], strides = [1, 1]} : vector<2x128xf32> to vector<2x32xf32>
    %264 = vector.extract_strided_slice %262 {offsets = [0, 32], sizes = [2, 32], strides = [1, 1]} : vector<2x128xf32> to vector<2x32xf32>
    %265 = vector.extract_strided_slice %262 {offsets = [0, 64], sizes = [2, 32], strides = [1, 1]} : vector<2x128xf32> to vector<2x32xf32>
    %266 = vector.extract_strided_slice %262 {offsets = [0, 96], sizes = [2, 32], strides = [1, 1]} : vector<2x128xf32> to vector<2x32xf32>
    %267 = arith.mulf %264, %249 : vector<2x32xf32>
    %268 = arith.mulf %263, %265 : vector<2x32xf32>
    %269 = arith.addf %267, %268 : vector<2x32xf32>
    %270 = math.tanh %269 : vector<2x32xf32>
    %271 = arith.mulf %266, %270 : vector<2x32xf32>
    %c2_96 = arith.constant 2 : index
    %c0_97 = arith.constant 0 : index
    %272 = vector.load %arg16[%c2_96, %c0_97] : memref<18x32xf32, #tpu.memory_space<vmem>>, vector<2x32xf32>
    tpu.vector_store %arg16[%c2_96, %c0_97], %271 {strides = array<i32>} : memref<18x32xf32, #tpu.memory_space<vmem>>, vector<2x32xf32>,
    %c4_98 = arith.constant 4 : index
    %c0_99 = arith.constant 0 : index
    %273 = vector.load %arg17[%c4_98, %c0_99] : memref<18x128xf32, #tpu.memory_space<vmem>>, vector<2x128xf32>
    %cst_100 = arith.constant dense<0.000000e+00> : vector<2x128xf32>
    %274 = tpu.matmul %271, %232, %cst_100 {dimension_numbers = #tpu.dot_dimension_numbers<[1], [0], [0], [1], [0, 0, 1, 1], [], []>} : vector<2x32xf32>, vector<32x128xf32>, vector<2x128xf32> -> vector<2x128xf32>
    %275 = arith.addf %273, %274 : vector<2x128xf32>
    %276 = math.tanh %275 : vector<2x128xf32>
    %277 = arith.negf %275 : vector<2x128xf32>
    %278 = math.exp %277 : vector<2x128xf32>
    %cst_101 = arith.constant 1.000000e+00 : f32
    %279 = vector.broadcast %cst_101 : f32 to vector<2x128xf32>
    %280 = arith.addf %279, %278 : vector<2x128xf32>
    %281 = arith.divf %279, %280 : vector<2x128xf32>
    %282 = arith.select %24, %276, %281 : vector<2x128xi1>, vector<2x128xf32>
    %283 = vector.extract_strided_slice %282 {offsets = [0, 0], sizes = [2, 32], strides = [1, 1]} : vector<2x128xf32> to vector<2x32xf32>
    %284 = vector.extract_strided_slice %282 {offsets = [0, 32], sizes = [2, 32], strides = [1, 1]} : vector<2x128xf32> to vector<2x32xf32>
    %285 = vector.extract_strided_slice %282 {offsets = [0, 64], sizes = [2, 32], strides = [1, 1]} : vector<2x128xf32> to vector<2x32xf32>
    %286 = vector.extract_strided_slice %282 {offsets = [0, 96], sizes = [2, 32], strides = [1, 1]} : vector<2x128xf32> to vector<2x32xf32>
    %287 = arith.mulf %284, %269 : vector<2x32xf32>
    %288 = arith.mulf %283, %285 : vector<2x32xf32>
    %289 = arith.addf %287, %288 : vector<2x32xf32>
    %290 = math.tanh %289 : vector<2x32xf32>
    %291 = arith.mulf %286, %290 : vector<2x32xf32>
    %c4_102 = arith.constant 4 : index
    %c0_103 = arith.constant 0 : index
    %292 = vector.load %arg16[%c4_102, %c0_103] : memref<18x32xf32, #tpu.memory_space<vmem>>, vector<2x32xf32>
    tpu.vector_store %arg16[%c4_102, %c0_103], %291 {strides = array<i32>} : memref<18x32xf32, #tpu.memory_space<vmem>>, vector<2x32xf32>,
    %c6_104 = arith.constant 6 : index
    %c0_105 = arith.constant 0 : index
    %293 = vector.load %arg17[%c6_104, %c0_105] : memref<18x128xf32, #tpu.memory_space<vmem>>, vector<2x128xf32>
    %cst_106 = arith.constant dense<0.000000e+00> : vector<2x128xf32>
    %294 = tpu.matmul %291, %232, %cst_106 {dimension_numbers = #tpu.dot_dimension_numbers<[1], [0], [0], [1], [0, 0, 1, 1], [], []>} : vector<2x32xf32>, vector<32x128xf32>, vector<2x128xf32> -> vector<2x128xf32>
    %295 = arith.addf %293, %294 : vector<2x128xf32>
    %296 = math.tanh %295 : vector<2x128xf32>
    %297 = arith.negf %295 : vector<2x128xf32>
    %298 = math.exp %297 : vector<2x128xf32>
    %cst_107 = arith.constant 1.000000e+00 : f32
    %299 = vector.broadcast %cst_107 : f32 to vector<2x128xf32>
    %300 = arith.addf %299, %298 : vector<2x128xf32>
    %301 = arith.divf %299, %300 : vector<2x128xf32>
    %302 = arith.select %24, %296, %301 : vector<2x128xi1>, vector<2x128xf32>
    %303 = vector.extract_strided_slice %302 {offsets = [0, 0], sizes = [2, 32], strides = [1, 1]} : vector<2x128xf32> to vector<2x32xf32>
    %304 = vector.extract_strided_slice %302 {offsets = [0, 32], sizes = [2, 32], strides = [1, 1]} : vector<2x128xf32> to vector<2x32xf32>
    %305 = vector.extract_strided_slice %302 {offsets = [0, 64], sizes = [2, 32], strides = [1, 1]} : vector<2x128xf32> to vector<2x32xf32>
    %306 = vector.extract_strided_slice %302 {offsets = [0, 96], sizes = [2, 32], strides = [1, 1]} : vector<2x128xf32> to vector<2x32xf32>
    %307 = arith.mulf %304, %289 : vector<2x32xf32>
    %308 = arith.mulf %303, %305 : vector<2x32xf32>
    %309 = arith.addf %307, %308 : vector<2x32xf32>
    %310 = math.tanh %309 : vector<2x32xf32>
    %311 = arith.mulf %306, %310 : vector<2x32xf32>
    %c6_108 = arith.constant 6 : index
    %c0_109 = arith.constant 0 : index
    %312 = vector.load %arg16[%c6_108, %c0_109] : memref<18x32xf32, #tpu.memory_space<vmem>>, vector<2x32xf32>
    tpu.vector_store %arg16[%c6_108, %c0_109], %311 {strides = array<i32>} : memref<18x32xf32, #tpu.memory_space<vmem>>, vector<2x32xf32>,
    %c8_110 = arith.constant 8 : index
    %c0_111 = arith.constant 0 : index
    %313 = vector.load %arg17[%c8_110, %c0_111] : memref<18x128xf32, #tpu.memory_space<vmem>>, vector<2x128xf32>
    %cst_112 = arith.constant dense<0.000000e+00> : vector<2x128xf32>
    %314 = tpu.matmul %311, %232, %cst_112 {dimension_numbers = #tpu.dot_dimension_numbers<[1], [0], [0], [1], [0, 0, 1, 1], [], []>} : vector<2x32xf32>, vector<32x128xf32>, vector<2x128xf32> -> vector<2x128xf32>
    %315 = arith.addf %313, %314 : vector<2x128xf32>
    %316 = math.tanh %315 : vector<2x128xf32>
    %317 = arith.negf %315 : vector<2x128xf32>
    %318 = math.exp %317 : vector<2x128xf32>
    %cst_113 = arith.constant 1.000000e+00 : f32
    %319 = vector.broadcast %cst_113 : f32 to vector<2x128xf32>
    %320 = arith.addf %319, %318 : vector<2x128xf32>
    %321 = arith.divf %319, %320 : vector<2x128xf32>
    %322 = arith.select %24, %316, %321 : vector<2x128xi1>, vector<2x128xf32>
    %323 = vector.extract_strided_slice %322 {offsets = [0, 0], sizes = [2, 32], strides = [1, 1]} : vector<2x128xf32> to vector<2x32xf32>
    %324 = vector.extract_strided_slice %322 {offsets = [0, 32], sizes = [2, 32], strides = [1, 1]} : vector<2x128xf32> to vector<2x32xf32>
    %325 = vector.extract_strided_slice %322 {offsets = [0, 64], sizes = [2, 32], strides = [1, 1]} : vector<2x128xf32> to vector<2x32xf32>
    %326 = vector.extract_strided_slice %322 {offsets = [0, 96], sizes = [2, 32], strides = [1, 1]} : vector<2x128xf32> to vector<2x32xf32>
    %327 = arith.mulf %324, %309 : vector<2x32xf32>
    %328 = arith.mulf %323, %325 : vector<2x32xf32>
    %329 = arith.addf %327, %328 : vector<2x32xf32>
    %330 = math.tanh %329 : vector<2x32xf32>
    %331 = arith.mulf %326, %330 : vector<2x32xf32>
    %c8_114 = arith.constant 8 : index
    %c0_115 = arith.constant 0 : index
    %332 = vector.load %arg16[%c8_114, %c0_115] : memref<18x32xf32, #tpu.memory_space<vmem>>, vector<2x32xf32>
    tpu.vector_store %arg16[%c8_114, %c0_115], %331 {strides = array<i32>} : memref<18x32xf32, #tpu.memory_space<vmem>>, vector<2x32xf32>,
    %c10_116 = arith.constant 10 : index
    %c0_117 = arith.constant 0 : index
    %333 = vector.load %arg17[%c10_116, %c0_117] : memref<18x128xf32, #tpu.memory_space<vmem>>, vector<2x128xf32>
    %cst_118 = arith.constant dense<0.000000e+00> : vector<2x128xf32>
    %334 = tpu.matmul %331, %232, %cst_118 {dimension_numbers = #tpu.dot_dimension_numbers<[1], [0], [0], [1], [0, 0, 1, 1], [], []>} : vector<2x32xf32>, vector<32x128xf32>, vector<2x128xf32> -> vector<2x128xf32>
    %335 = arith.addf %333, %334 : vector<2x128xf32>
    %336 = math.tanh %335 : vector<2x128xf32>
    %337 = arith.negf %335 : vector<2x128xf32>
    %338 = math.exp %337 : vector<2x128xf32>
    %cst_119 = arith.constant 1.000000e+00 : f32
    %339 = vector.broadcast %cst_119 : f32 to vector<2x128xf32>
    %340 = arith.addf %339, %338 : vector<2x128xf32>
    %341 = arith.divf %339, %340 : vector<2x128xf32>
    %342 = arith.select %24, %336, %341 : vector<2x128xi1>, vector<2x128xf32>
    %343 = vector.extract_strided_slice %342 {offsets = [0, 0], sizes = [2, 32], strides = [1, 1]} : vector<2x128xf32> to vector<2x32xf32>
    %344 = vector.extract_strided_slice %342 {offsets = [0, 32], sizes = [2, 32], strides = [1, 1]} : vector<2x128xf32> to vector<2x32xf32>
    %345 = vector.extract_strided_slice %342 {offsets = [0, 64], sizes = [2, 32], strides = [1, 1]} : vector<2x128xf32> to vector<2x32xf32>
    %346 = vector.extract_strided_slice %342 {offsets = [0, 96], sizes = [2, 32], strides = [1, 1]} : vector<2x128xf32> to vector<2x32xf32>
    %347 = arith.mulf %344, %329 : vector<2x32xf32>
    %348 = arith.mulf %343, %345 : vector<2x32xf32>
    %349 = arith.addf %347, %348 : vector<2x32xf32>
    %350 = math.tanh %349 : vector<2x32xf32>
    %351 = arith.mulf %346, %350 : vector<2x32xf32>
    %c10_120 = arith.constant 10 : index
    %c0_121 = arith.constant 0 : index
    %352 = vector.load %arg16[%c10_120, %c0_121] : memref<18x32xf32, #tpu.memory_space<vmem>>, vector<2x32xf32>
    tpu.vector_store %arg16[%c10_120, %c0_121], %351 {strides = array<i32>} : memref<18x32xf32, #tpu.memory_space<vmem>>, vector<2x32xf32>,
    %c12_122 = arith.constant 12 : index
    %c0_123 = arith.constant 0 : index
    %353 = vector.load %arg17[%c12_122, %c0_123] : memref<18x128xf32, #tpu.memory_space<vmem>>, vector<2x128xf32>
    %cst_124 = arith.constant dense<0.000000e+00> : vector<2x128xf32>
    %354 = tpu.matmul %351, %232, %cst_124 {dimension_numbers = #tpu.dot_dimension_numbers<[1], [0], [0], [1], [0, 0, 1, 1], [], []>} : vector<2x32xf32>, vector<32x128xf32>, vector<2x128xf32> -> vector<2x128xf32>
    %355 = arith.addf %353, %354 : vector<2x128xf32>
    %356 = math.tanh %355 : vector<2x128xf32>
    %357 = arith.negf %355 : vector<2x128xf32>
    %358 = math.exp %357 : vector<2x128xf32>
    %cst_125 = arith.constant 1.000000e+00 : f32
    %359 = vector.broadcast %cst_125 : f32 to vector<2x128xf32>
    %360 = arith.addf %359, %358 : vector<2x128xf32>
    %361 = arith.divf %359, %360 : vector<2x128xf32>
    %362 = arith.select %24, %356, %361 : vector<2x128xi1>, vector<2x128xf32>
    %363 = vector.extract_strided_slice %362 {offsets = [0, 0], sizes = [2, 32], strides = [1, 1]} : vector<2x128xf32> to vector<2x32xf32>
    %364 = vector.extract_strided_slice %362 {offsets = [0, 32], sizes = [2, 32], strides = [1, 1]} : vector<2x128xf32> to vector<2x32xf32>
    %365 = vector.extract_strided_slice %362 {offsets = [0, 64], sizes = [2, 32], strides = [1, 1]} : vector<2x128xf32> to vector<2x32xf32>
    %366 = vector.extract_strided_slice %362 {offsets = [0, 96], sizes = [2, 32], strides = [1, 1]} : vector<2x128xf32> to vector<2x32xf32>
    %367 = arith.mulf %364, %349 : vector<2x32xf32>
    %368 = arith.mulf %363, %365 : vector<2x32xf32>
    %369 = arith.addf %367, %368 : vector<2x32xf32>
    %370 = math.tanh %369 : vector<2x32xf32>
    %371 = arith.mulf %366, %370 : vector<2x32xf32>
    %c12_126 = arith.constant 12 : index
    %c0_127 = arith.constant 0 : index
    %372 = vector.load %arg16[%c12_126, %c0_127] : memref<18x32xf32, #tpu.memory_space<vmem>>, vector<2x32xf32>
    tpu.vector_store %arg16[%c12_126, %c0_127], %371 {strides = array<i32>} : memref<18x32xf32, #tpu.memory_space<vmem>>, vector<2x32xf32>,
    %c14_128 = arith.constant 14 : index
    %c0_129 = arith.constant 0 : index
    %373 = vector.load %arg17[%c14_128, %c0_129] : memref<18x128xf32, #tpu.memory_space<vmem>>, vector<2x128xf32>
    %cst_130 = arith.constant dense<0.000000e+00> : vector<2x128xf32>
    %374 = tpu.matmul %371, %232, %cst_130 {dimension_numbers = #tpu.dot_dimension_numbers<[1], [0], [0], [1], [0, 0, 1, 1], [], []>} : vector<2x32xf32>, vector<32x128xf32>, vector<2x128xf32> -> vector<2x128xf32>
    %375 = arith.addf %373, %374 : vector<2x128xf32>
    %376 = math.tanh %375 : vector<2x128xf32>
    %377 = arith.negf %375 : vector<2x128xf32>
    %378 = math.exp %377 : vector<2x128xf32>
    %cst_131 = arith.constant 1.000000e+00 : f32
    %379 = vector.broadcast %cst_131 : f32 to vector<2x128xf32>
    %380 = arith.addf %379, %378 : vector<2x128xf32>
    %381 = arith.divf %379, %380 : vector<2x128xf32>
    %382 = arith.select %24, %376, %381 : vector<2x128xi1>, vector<2x128xf32>
    %383 = vector.extract_strided_slice %382 {offsets = [0, 0], sizes = [2, 32], strides = [1, 1]} : vector<2x128xf32> to vector<2x32xf32>
    %384 = vector.extract_strided_slice %382 {offsets = [0, 32], sizes = [2, 32], strides = [1, 1]} : vector<2x128xf32> to vector<2x32xf32>
    %385 = vector.extract_strided_slice %382 {offsets = [0, 64], sizes = [2, 32], strides = [1, 1]} : vector<2x128xf32> to vector<2x32xf32>
    %386 = vector.extract_strided_slice %382 {offsets = [0, 96], sizes = [2, 32], strides = [1, 1]} : vector<2x128xf32> to vector<2x32xf32>
    %387 = arith.mulf %384, %369 : vector<2x32xf32>
    %388 = arith.mulf %383, %385 : vector<2x32xf32>
    %389 = arith.addf %387, %388 : vector<2x32xf32>
    %390 = math.tanh %389 : vector<2x32xf32>
    %391 = arith.mulf %386, %390 : vector<2x32xf32>
    %c14_132 = arith.constant 14 : index
    %c0_133 = arith.constant 0 : index
    %392 = vector.load %arg16[%c14_132, %c0_133] : memref<18x32xf32, #tpu.memory_space<vmem>>, vector<2x32xf32>
    tpu.vector_store %arg16[%c14_132, %c0_133], %391 {strides = array<i32>} : memref<18x32xf32, #tpu.memory_space<vmem>>, vector<2x32xf32>,
    %c16_134 = arith.constant 16 : index
    %c0_135 = arith.constant 0 : index
    %393 = vector.load %arg17[%c16_134, %c0_135] : memref<18x128xf32, #tpu.memory_space<vmem>>, vector<2x128xf32>
    %cst_136 = arith.constant dense<0.000000e+00> : vector<2x128xf32>
    %394 = tpu.matmul %391, %232, %cst_136 {dimension_numbers = #tpu.dot_dimension_numbers<[1], [0], [0], [1], [0, 0, 1, 1], [], []>} : vector<2x32xf32>, vector<32x128xf32>, vector<2x128xf32> -> vector<2x128xf32>
    %395 = arith.addf %393, %394 : vector<2x128xf32>
    %396 = math.tanh %395 : vector<2x128xf32>
    %397 = arith.negf %395 : vector<2x128xf32>
    %398 = math.exp %397 : vector<2x128xf32>
    %cst_137 = arith.constant 1.000000e+00 : f32
    %399 = vector.broadcast %cst_137 : f32 to vector<2x128xf32>
    %400 = arith.addf %399, %398 : vector<2x128xf32>
    %401 = arith.divf %399, %400 : vector<2x128xf32>
    %402 = arith.select %24, %396, %401 : vector<2x128xi1>, vector<2x128xf32>
    %403 = vector.extract_strided_slice %402 {offsets = [0, 0], sizes = [2, 32], strides = [1, 1]} : vector<2x128xf32> to vector<2x32xf32>
    %404 = vector.extract_strided_slice %402 {offsets = [0, 32], sizes = [2, 32], strides = [1, 1]} : vector<2x128xf32> to vector<2x32xf32>
    %405 = vector.extract_strided_slice %402 {offsets = [0, 64], sizes = [2, 32], strides = [1, 1]} : vector<2x128xf32> to vector<2x32xf32>
    %406 = vector.extract_strided_slice %402 {offsets = [0, 96], sizes = [2, 32], strides = [1, 1]} : vector<2x128xf32> to vector<2x32xf32>
    %407 = arith.mulf %404, %389 : vector<2x32xf32>
    %408 = arith.mulf %403, %405 : vector<2x32xf32>
    %409 = arith.addf %407, %408 : vector<2x32xf32>
    %410 = math.tanh %409 : vector<2x32xf32>
    %411 = arith.mulf %406, %410 : vector<2x32xf32>
    %c16_138 = arith.constant 16 : index
    %c0_139 = arith.constant 0 : index
    %412 = vector.load %arg16[%c16_138, %c0_139] : memref<18x32xf32, #tpu.memory_space<vmem>>, vector<2x32xf32>
    tpu.vector_store %arg16[%c16_138, %c0_139], %411 {strides = array<i32>} : memref<18x32xf32, #tpu.memory_space<vmem>>, vector<2x32xf32>,
    %c1_140 = arith.constant 1 : index
    %c0_141 = arith.constant 0 : index
    %c0_142 = arith.constant 0 : index
    %413 = vector.load %arg14[%c1_140, %c0_141, %c0_142] : memref<2x2x32xf32, #tpu.memory_space<vmem>>, vector<1x2x32xf32>
    %414 = vector.shape_cast %413 : vector<1x2x32xf32> to vector<2x32xf32>
    %415 = vector.shape_cast %411 : vector<2x32xf32> to vector<1x2x32xf32>
    tpu.vector_store %arg14[%c1_140, %c0_141, %c0_142], %415 {strides = array<i32>} : memref<2x2x32xf32, #tpu.memory_space<vmem>>, vector<1x2x32xf32>,
    %c1_143 = arith.constant 1 : index
    %c0_144 = arith.constant 0 : index
    %c0_145 = arith.constant 0 : index
    %416 = vector.load %arg15[%c1_143, %c0_144, %c0_145] : memref<2x2x32xf32, #tpu.memory_space<vmem>>, vector<1x2x32xf32>
    %417 = vector.shape_cast %416 : vector<1x2x32xf32> to vector<2x32xf32>
    %418 = vector.shape_cast %409 : vector<2x32xf32> to vector<1x2x32xf32>
    tpu.vector_store %arg15[%c1_143, %c0_144, %c0_145], %418 {strides = array<i32>} : memref<2x2x32xf32, #tpu.memory_space<vmem>>, vector<1x2x32xf32>,
    %c0_146 = arith.constant 0 : index
    %c0_147 = arith.constant 0 : index
    %419 = vector.load %arg16[%c0_146, %c0_147] : memref<18x32xf32, #tpu.memory_space<vmem>>, vector<18x32xf32>
    %c0_148 = arith.constant 0 : index
    %c0_149 = arith.constant 0 : index
    %420 = vector.load %arg9[%c0_148, %c0_149] : memref<32x2xf32, #tpu.memory_space<vmem>>, vector<32x2xf32>
    %cst_150 = arith.constant dense<0.000000e+00> : vector<18x2xf32>
    %421 = tpu.matmul %419, %420, %cst_150 {dimension_numbers = #tpu.dot_dimension_numbers<[1], [0], [0], [1], [0, 0, 1, 1], [], []>} : vector<18x32xf32>, vector<32x2xf32>, vector<18x2xf32> -> vector<18x2xf32>
    %c0_151 = arith.constant 0 : index
    %c0_152 = arith.constant 0 : index
    %422 = vector.load %arg10[%c0_151, %c0_152] : memref<1x2xf32, #tpu.memory_space<vmem>>, vector<1x2xf32>
    %423 = vector.broadcast %422 : vector<1x2xf32> to vector<18x2xf32>
    %424 = arith.addf %421, %423 : vector<18x2xf32>
    %425 = math.tanh %424 : vector<18x2xf32>
    %c0_153 = arith.constant 0 : index
    %c0_154 = arith.constant 0 : index
    %426 = vector.load %arg11[%c0_153, %c0_154] : memref<32x3xf32, #tpu.memory_space<vmem>>, vector<32x3xf32>
    %cst_155 = arith.constant dense<0.000000e+00> : vector<18x3xf32>
    %427 = tpu.matmul %419, %426, %cst_155 {dimension_numbers = #tpu.dot_dimension_numbers<[1], [0], [0], [1], [0, 0, 1, 1], [], []>} : vector<18x32xf32>, vector<32x3xf32>, vector<18x3xf32> -> vector<18x3xf32>
    %c0_156 = arith.constant 0 : index
    %c0_157 = arith.constant 0 : index
    %428 = vector.load %arg12[%c0_156, %c0_157] : memref<1x3xf32, #tpu.memory_space<vmem>>, vector<1x3xf32>
    %429 = vector.broadcast %428 : vector<1x3xf32> to vector<18x3xf32>
    %430 = arith.addf %427, %429 : vector<18x3xf32>
    %cst_158 = arith.constant dense<0xFF800000> : vector<18xf32>
    %431 = vector.multi_reduction <maximumf>, %430, %cst_158 [1] : vector<18x3xf32> to vector<18xf32>
    %432 = vector.shape_cast %431 : vector<18xf32> to vector<18x1xf32>
    %433 = vector.broadcast %432 : vector<18x1xf32> to vector<18x3xf32>
    %434 = arith.subf %430, %433 : vector<18x3xf32>
    %435 = math.exp %434 : vector<18x3xf32>
    %cst_159 = arith.constant dense<0.000000e+00> : vector<18xf32>
    %436 = vector.multi_reduction <add>, %435, %cst_159 [1] : vector<18x3xf32> to vector<18xf32>
    %437 = vector.shape_cast %436 : vector<18xf32> to vector<18x1xf32>
    %438 = vector.broadcast %437 : vector<18x1xf32> to vector<18x3xf32>
    %439 = arith.divf %435, %438 : vector<18x3xf32>
    %440 = tpu.concatenate %425, %439 in 1 : vector<18x2xf32>, vector<18x3xf32> -> vector<18x5xf32>
    %c0_160 = arith.constant 0 : index
    %c0_161 = arith.constant 0 : index
    %441 = vector.load %arg13[%c0_160, %c0_161] : memref<18x5xf32, #tpu.memory_space<vmem>>, vector<18x5xf32>
    tpu.vector_store %arg13[%c0_160, %c0_161], %440 {strides = array<i32>} : memref<18x5xf32, #tpu.memory_space<vmem>>, vector<18x5xf32>,
    return
  }
}

</mosaic_0001>

<bundles_post_ra>
// kernel: tpu_custom_call.1
= control target key start
LH: loop header
LB: loop body
LE: loop exit
PB: predicated region body
PF: predicated region fallthrough
CT: control target
= control target key end

     0   :  { %21 = vsyncpa [#allocation5], 0  ;;  %s2658_s0 = inlined_call_operand.hbm [shape: f32[2,16], index: 0, kind: input, shape index: {}]   ;;  %s2659_s1 = inlined_call_operand.vmem [shape: f32[18,5], index: 1, kind: input, shape index: {}]   ;;  %s2660_s2 = inlined_call_operand.hbm [shape: f32[16,64], index: 2, kind: input, shape index: {}]   ;;  %s2661_s3 = inlined_call_operand.vmem [shape: f32[1,64], index: 3, kind: input, shape index: {}]   ;;  %s2662_s4 = inlined_call_operand.hbm [shape: f32[16,128], index: 4, kind: input, shape index: {}]   ;;  %s2663_s5 = inlined_call_operand.hbm [shape: f32[5,128], index: 5, kind: input, shape index: {}]   ;;  %s2664_s6 = inlined_call_operand.vmem [shape: f32[1,32,128], index: 6, kind: input, shape index: {}]   ;;  %s2665_s7 = inlined_call_operand.vmem [shape: f32[2,32,128], index: 7, kind: input, shape index: {}]   ;;  %s2666_s8 = inlined_call_operand.vmem [shape: f32[2,1,128], index: 8, kind: input, shape index: {}]   ;;  %s2667_s9 = inlined_call_operand.vmem [shape: f32[32,2], index: 9, kind: input, shape index: {}]   ;;  %s2668_s10 = inlined_call_operand.vmem [shape: f32[1,2], index: 10, kind: input, shape index: {}]   ;;  %s2669_s11 = inlined_call_operand.vmem [shape: f32[32,3], index: 11, kind: input, shape index: {}]   ;;  %s2670_s12 = inlined_call_operand.vmem [shape: f32[1,3], index: 12, kind: input, shape index: {}]   ;;  %s2671_s13 = inlined_call_operand.vmem [shape: f32[18,5], index: 13, kind: output, shape index: {0}]   ;;  %s2672_s14 = inlined_call_operand.hbm [shape: f32[2,2,32], index: 14, kind: output, shape index: {1}]   ;;  %s2673_s15 = inlined_call_operand.hbm [shape: f32[2,2,32], index: 15, kind: output, shape index: {2}]  }
   0x1   :  { %22 = vsyncpa [#allocation8], 0 }
   0x2   :  { %23 = vsyncpa [#allocation11], 0 }
   0x3   :  { %24 = vsyncpa [#allocation6], 0  ;;  %s43_s20 = sshll.u32 %s2660_s2, 4  ;;  %s44_s20 = int_to_ptr.hbm [resolvable:$true] %s43_s20 }
   0x4   :  { %25 = vsyncpa [#allocation14], 0  ;;  %s2119_s21 = smov [#allocation7]   ;;  %s31_s25 = sshll.u32 %s2658_s0, 4  ;;  %s32_s25 = int_to_ptr.hbm [resolvable:$true] %s31_s25 }
   0x5   :  { %s45_s22 = sshll.u32 %s2119_s21, 4  ;;  %s2120_s26 = smov 128   ;;  %s46_s22 = int_to_ptr.vmem [resolvable:$true] %s45_s22 }
   0x6   :  { %s2121_s27 = smov 8   ;;  %s2122_s28 = smov [#allocation4]  }
   0x7   :  { %51 = dma.hbm_to_vmem [thread:$0]  %s44_s20, 256, %s46_s22, [#allocation8], %s2120_s26, %s2120_s26, %s2121_s27  }
   0x8   :  { %s33_s29 = sshll.u32 %s2122_s28, 4  ;;  %s58_s17 = sshll.u32 %s2662_s4, 4  ;;  %s34_s29 = int_to_ptr.vmem [resolvable:$true] %s33_s29  ;;  %s59_s17 = int_to_ptr.hbm [resolvable:$true] %s58_s17 }
   0x9   :  { %36 = dma.hbm_to_vmem [thread:$0]  %s32_s25, 32, %s34_s29, [#allocation5]  }
   0xa   :  { %s72_s19 = sshll.u32 %s2663_s5, 4  ;;  %s2123_s21 = smov [#allocation9]   ;;  %s73_s19 = int_to_ptr.hbm [resolvable:$true] %s72_s19 }
   0xb   :  { %s60_s23 = sshll.u32 %s2123_s21, 4  ;;  %s2124_s0 = smov [#allocation10]   ;;  %s61_s23 = int_to_ptr.vmem [resolvable:$true] %s60_s23 }
   0xc   :  { %66 = dma.hbm_to_vmem [thread:$0]  %s59_s17, 256, %s61_s23, [#allocation8], %s2120_s26, %s2120_s26, %s2121_s27  }
   0xd   :  { %s74_s20 = sshll.u32 %s2124_s0, 4  ;;  %s75_s20 = int_to_ptr.vmem [resolvable:$true] %s74_s20 }
   0xe   :  { %77 = dma.hbm_to_vmem [thread:$0]  %s73_s19, 128, %s75_s20, [#allocation11]  }
   0xf   :  { %2109 = dma.done.wait [#allocation5], 32  }
  0x10   :  { %2110 = vsyncadd [#allocation5], 4294967264 }
  0x11   :  { %2111 = dma.done.wait [#allocation8], 512  }
  0x12   :  { %2112 = vsyncadd [#allocation8], 4294966784 }
  0x13   :  { %2113 = dma.done.wait [#allocation11], 128  }
  0x14   :  { %2114 = vsyncadd [#allocation11], 4294967168  ;;  %vm156_vm0 = vcmask 1044480   ;;  %v110_v0 = vld [vmem:[#allocation7 + $0x8] sm:$0xff]  ;;  %v109_v1 = vld [vmem:[#allocation7] sm:$0xff]  ;;  %vm146_vm1 = vcmask 39936   ;;  %v213_v30 = vlaneseq }
  0x15   :  { %v108_v2 = vld [vmem:[#allocation4] sm:$0x3]  ;;  %133 = vmatpush.msra.mxu0 %v110_v0  ;;  %vm115_vm2 = vcmask 130048   ;;  %v145_v3 = vld [vmem:[#allocation10] sm:$0x1f]  ;;  %v142_v4 = vld [vmem:[%s2659_s1] sm:$0xff] }
  0x16   :  { %v2229_v5 = vld [vmem:[%s2665_s7 + $0x18] sm:$0xff]  ;;  %1728 = vmatpush.msk.msra.mxu1 %vm156_vm0, %v145_v3  ;;  %v2236_v6 = vld [vmem:[%s2665_s7 + $0x10] sm:$0xff]  ;;  %v2243_v7 = vld [vmem:[%s2665_s7 + $0x8] sm:$0xff]  ;;  %vm223_vm3 = vcmask 261120   ;;  %v214_v32 = vand.u32 127, %v213_v30  ;;  %s2126_s0 = smov 32  }
  0x17   :  { %444 = vmatpush.msra.mxu3 %v2229_v5  ;;  %134 = vmatpush.msra.mxu0 %v109_v1  ;;  %v143_v8 = vld [vmem:[%s2659_s1 + $0x8] sm:$0xff]  ;;  %v144_v10 = vld [vmem:[%s2659_s1 + $0x10] sm:$0x3]  ;;  %v2263_v12 = vld [vmem:[%s2665_s7] sm:$0xff]  ;;  %vm291_vm11 = vcmask 254976   ;;  %s1692_s20 = sshll.u32 %s2672_s14, 4  ;;  %s1693_s20 = int_to_ptr.hbm [resolvable:$true] %s1692_s20 }
  0x18   :  { %1729 = vmatmul.msk.f32.vlgmr.msra.gmra.mxu1 %vm146_vm1, %v142_v4  ;;  %1727 = vmatmul.msk.f32.vlgmr.msra.gmra.mxu0 %vm115_vm2, %v108_v2  ;;  %v141_v9 = vld [vmem:[#allocation9 + $0x8] sm:$0xff]  ;;  %v140_v11 = vld [vmem:[#allocation9] sm:$0xff]  ;;  %v1795_v13 = vld [vmem:[%s2661_s3] ss:$0 sm:$0xff]  ;;  %vm215_vm4 = vcmp.ge.s32.totalorder %v214_v32, 64  ;;  %vm216_vm5 = vcmp.lt.s32.totalorder %v214_v32, 96 }
  0x19   :  { %239 = vmatpush.msrb.mxu1 %v2229_v5  ;;  %308 = vmatpush.msrb.mxu0 %v2229_v5  ;;  %v1796_v20 = vld [vmem:[%s2666_s8] ss:$0 sm:$0xff]  ;;  %vm2298_vm7 = vmand %vm215_vm4, %vm216_vm5  ;;  %s2125_s3 = smov 64   ;;  %s2130_s4 = smov [#allocation13]  }
  0x1a   :  { %445 = vmatpush.msra.mxu3 %v2236_v6  ;;  %207 = vmatpush.msra.mxu2 %v141_v9  ;;  %s1703_s5 = sshll.u32 %s2130_s4, 4  ;;  %s1704_s5 = int_to_ptr.vmem [resolvable:$true] %s1703_s5 }
  0x1b   :  { %240 = vmatpush.msrb.mxu1 %v2236_v6  ;;  %309 = vmatpush.msrb.mxu0 %v2236_v6 }
  0x1c   :  { %446 = vmatpush.msra.mxu3 %v2243_v7  ;;  %208 = vmatpush.msra.mxu2 %v140_v11 }
  0x1d   :  { %241 = vmatpush.msrb.mxu1 %v2243_v7  ;;  %310 = vmatpush.msrb.mxu0 %v2243_v7 }
  0x1e   :  { %1732 = vmatmul.msk.f32.vlgmr.msra.gmra.mxu2 %vm115_vm2, %v108_v2  ;;  %447 = vmatpush.msra.mxu3 %v2263_v12 }
  0x1f   :  { %242 = vmatpush.msrb.mxu1 %v2263_v12  ;;  %311 = vmatpush.msrb.mxu0 %v2263_v12 }
  0x20   :  { %1730 = vmatmul.msk.f32.gmra.mxu1 %vm146_vm1, %v143_v8  ;;  %580 = vmatpush.msrb.mxu2 %v2229_v5 }
  0x21   :  { %376 = vmatpush.msra.mxu0 %v2229_v5  ;;  %648 = vmatpush.msrb.mxu3 %v2229_v5 }
  0x22   :  { %716 = vmatpush.msra.mxu1 %v2229_v5  ;;  %581 = vmatpush.msrb.mxu2 %v2236_v6 }
  0x23   :  { %377 = vmatpush.msra.mxu0 %v2236_v6  ;;  %649 = vmatpush.msrb.mxu3 %v2236_v6 }
  0x24   :  { %717 = vmatpush.msra.mxu1 %v2236_v6  ;;  %582 = vmatpush.msrb.mxu2 %v2243_v7 }
  0x25   :  { %378 = vmatpush.msra.mxu0 %v2243_v7  ;;  %650 = vmatpush.msrb.mxu3 %v2243_v7 }
  0x26   :  { %718 = vmatpush.msra.mxu1 %v2243_v7  ;;  %583 = vmatpush.msrb.mxu2 %v2263_v12 }
  0x27   :  { %379 = vmatpush.msra.mxu0 %v2263_v12  ;;  %651 = vmatpush.msrb.mxu3 %v2263_v12 }
  0x28   :  { %1731 = vmatmul.msk.f32.gmra.mxu1 %vm146_vm1, %v144_v10 }
  0x29   :  { %719 = vmatpush.msra.mxu1 %v2263_v12 }
  0x95   :  { %v177_v14 = vpop.f32.mrf.mxu1  ;;  %v136_v15 = vpop.f32.mrf.mxu0 }
  0x96   :  { %186 = vst [vmem:[#allocation3] sm:$0xff] %v177_v14  ;;  %v137_v16 = vadd.f32 %v1795_v13, %v136_v15 }
  0x98   :  { %1800 = vtanh.f32 %v137_v16 }
  0x9d   :  { %v180_v17 = vpop.f32.mrf.mxu1  ;;  %v222_v23 = vld [vmem:[#allocation3] sm:$0x3]  ;;  %v293_v54 = vld [vmem:[#allocation3 + $0x2] sm:$0x3] }
  0x9e   :  { %187 = vst [vmem:[#allocation3 + $0x8] sm:$0xff] %v180_v17  ;;  %v2288_v18 = vpop.eup %1800 }
  0x9f   :  { %1733 = vmatmul.msk.f32.vlgmr.msrb.gmra.mxu1 %vm223_vm3, %v2288_v18 }
  0xa1   :  { %v210_v21 = vpop.f32.mrf.mxu2 }
  0xa2   :  { %v2295_v22 = vadd.f32 %v1796_v20, %v210_v21 }
  0xa5   :  { %v183_v19 = vpop.f32.mrf.mxu1 }
  0xa6   :  { %188 = vst [vmem:[#allocation3 + $0x10] sm:$0x3] %v183_v19 }
 0x11c   :  { %v244_v24 = vpop.f32.mrf.mxu1 }
 0x11d   :  { %v247_v25 = vadd.f32 %v244_v24, %v222_v23  ;;  %v361_v24 = vld [vmem:[#allocation3 + $0x4] sm:$0x3] }
 0x11f   :  { %v248_v26 = vadd.f32 %v247_v25, %v2295_v22 }
 0x121   :  { %v1734_v27 = vmul.f32 -1.442695, %v248_v26 }
 0x123   :  { %1802 = vpow2.f32 %v1734_v27 }
 0x129   :  { %v1803_v28 = vpop.eup %1802 }
 0x12a   :  { %v253_v29 = vadd.f32 1.0, %v1803_v28 }
 0x12c   :  { %1804 = vrcp.f32 %v253_v29  ;;  %v265_v35 = vand.u32 2147483648, %v253_v29  ;;  %v263_v37 = vand.u32 2147483647, %v253_v29  ;;  %vm259_vm8 = vweird.f32 %v253_v29 }
 0x12d   :  { %1806 = vtanh.f32 %v248_v26 }
 0x12e   :  { %v266_v40 = vor.u32 1.1754944e-38, %v265_v35  ;;  %vm264_vm10 = vcmp.eq.f32.partialorder %v263_v37, 8.507059e+37 }
 0x132   :  { %v1805_v31 = vpop.eup %1804 }
 0x133   :  { %v255_v33 = vmul.f32 %v1805_v31, %v253_v29  ;;  %vm260_vm6 = vweird.f32 %v1805_v31  ;;  %v1807_v42 = vpop.eup %1806 }
 0x134   :  { %vm261_vm9 = vmor %vm259_vm8, %vm260_vm6 }
 0x135   :  { %v256_v34 = vsub.f32 1.0, %v255_v33 }
 0x137   :  { %v257_v36 = vmul.f32 %v1805_v31, %v256_v34 }
 0x139   :  { %v258_v39 = vadd.f32 %v1805_v31, %v257_v36 }
 0x13b   :  { %v262_v41 = vsel %vm261_vm9, %v1805_v31, %v258_v39 }
 0x13c   :  { %v267_v43 = vsel %vm264_vm10, %v266_v40, %v262_v41 }
 0x13d   :  { %v269_v44 = vsel %vm2298_vm7, %v1807_v42, %v267_v43 }
 0x13e   :  { %272 = vrot.lane.b32.xlu0 %v269_v44, %s2125_s3  ;;  %v270_v47 = vmul.f32 %v2288_v18, %v269_v44 }
 0x1b0   :  { %v273_v45 = vpop.permute.xlu0 %272 }
 0x1b1   :  { %v275_v46 = vmul.f32 %v273_v45, %v269_v44 }
 0x1b3   :  { %277 = vrot.lane.b32.xlu0 %v275_v46, %s2126_s0 }
 0x225   :  { %v278_v48 = vpop.permute.xlu0 %277 }
 0x226   :  { %v280_v49 = vadd.f32 %v278_v48, %v270_v47 }
 0x228   :  { %1808 = vtanh.f32 %v280_v49 }
 0x22e   :  { %v1809_v50 = vpop.eup %1808 }
 0x22f   :  { %283 = vrot.lane.b32.xlu1 %v1809_v50, %s2125_s3 }
 0x2a1   :  { %v284_v51 = vpop.permute.xlu1 %283 }
 0x2a2   :  { %v286_v52 = vmul.f32 %v284_v51, %v269_v44 }
 0x2a4   :  { %288 = vrot.lane.b32.xlu1 %v286_v52, %s2126_s0 }
 0x316   :  { %v289_v53 = vpop.permute.xlu1 %288 }
 0x317   :  { %292 = vst.msk [vmem:[#allocation2] sm:$0x3] %vm291_vm11, %v289_v53  ;;  %1735 = vmatmul.msk.f32.vlgmr.msrb.gmra.mxu0 %vm223_vm3, %v289_v53 }
 0x318   :  { %512 = vmatpush.msrb.mxu0 %v2229_v5 }
 0x31a   :  { %513 = vmatpush.msrb.mxu0 %v2236_v6 }
 0x31c   :  { %514 = vmatpush.msrb.mxu0 %v2243_v7 }
 0x31e   :  { %515 = vmatpush.msrb.mxu0 %v2263_v12 }
 0x394   :  { %v313_v55 = vpop.f32.mrf.mxu0 }
 0x395   :  { %v316_v56 = vadd.f32 %v313_v55, %v293_v54 }
 0x397   :  { %v317_v57 = vadd.f32 %v316_v56, %v2295_v22 }
 0x399   :  { %v1736_v58 = vmul.f32 -1.442695, %v317_v57 }
 0x39b   :  { %1810 = vpow2.f32 %v1736_v58 }
 0x3a1   :  { %v1811_v59 = vpop.eup %1810 }
 0x3a2   :  { %v322_v60 = vadd.f32 1.0, %v1811_v59 }
 0x3a4   :  { %1812 = vrcp.f32 %v322_v60  ;;  %v334_v0 = vand.u32 2147483648, %v322_v60  ;;  %v332_v2 = vand.u32 2147483647, %v322_v60  ;;  %vm328_vm13 = vweird.f32 %v322_v60 }
 0x3a5   :  { %1814 = vtanh.f32 %v317_v57 }
 0x3a6   :  { %v335_v4 = vor.u32 1.1754944e-38, %v334_v0  ;;  %vm333_vm15 = vcmp.eq.f32.partialorder %v332_v2, 8.507059e+37 }
 0x3aa   :  { %v1813_v61 = vpop.eup %1812 }
 0x3ab   :  { %v324_v62 = vmul.f32 %v1813_v61, %v322_v60  ;;  %vm329_vm12 = vweird.f32 %v1813_v61  ;;  %v1815_v9 = vpop.eup %1814 }
 0x3ac   :  { %vm330_vm14 = vmor %vm328_vm13, %vm329_vm12 }
 0x3ad   :  { %v325_v63 = vsub.f32 1.0, %v324_v62 }
 0x3af   :  { %v326_v1 = vmul.f32 %v1813_v61, %v325_v63 }
 0x3b1   :  { %v327_v3 = vadd.f32 %v1813_v61, %v326_v1 }
 0x3b3   :  { %v331_v8 = vsel %vm330_vm14, %v1813_v61, %v327_v3 }
 0x3b4   :  { %v336_v10 = vsel %vm333_vm15, %v335_v4, %v331_v8 }
 0x3b5   :  { %v338_v11 = vsel %vm2298_vm7, %v1815_v9, %v336_v10 }
 0x3b6   :  { %341 = vrot.lane.b32.xlu2 %v338_v11, %s2125_s3  ;;  %v339_v15 = vmul.f32 %v338_v11, %v280_v49  ;;  %v429_v49 = vld [vmem:[#allocation3 + $0x6] sm:$0x3] }
 0x410   :  { %v342_v13 = vpop.permute.xlu2 %341 }
 0x411   :  { %v344_v14 = vmul.f32 %v342_v13, %v338_v11 }
 0x413   :  { %346 = vrot.lane.b32.xlu2 %v344_v14, %s2126_s0 }
 0x46d   :  { %v347_v16 = vpop.permute.xlu2 %346 }
 0x46e   :  { %v349_v17 = vadd.f32 %v347_v16, %v339_v15 }
 0x470   :  { %1816 = vtanh.f32 %v349_v17 }
 0x476   :  { %v1817_v19 = vpop.eup %1816 }
 0x477   :  { %352 = vrot.lane.b32.xlu0 %v1817_v19, %s2125_s3 }
 0x4e9   :  { %v353_v20 = vpop.permute.xlu0 %352 }
 0x4ea   :  { %v355_v21 = vmul.f32 %v353_v20, %v338_v11 }
 0x4ec   :  { %357 = vrot.lane.b32.xlu1 %v355_v21, %s2126_s0 }
 0x55e   :  { %v358_v23 = vpop.permute.xlu1 %357 }
 0x55f   :  { %360 = vst.msk [vmem:[#allocation2 + $0x2] sm:$0x3] %vm291_vm11, %v358_v23  ;;  %1737 = vmatmul.msk.f32.vlgmr.msra.gmra.mxu0 %vm223_vm3, %v358_v23 }
 0x560   :  { %784 = vmatpush.msra.mxu0 %v2229_v5 }
 0x562   :  { %785 = vmatpush.msra.mxu0 %v2236_v6 }
 0x564   :  { %786 = vmatpush.msra.mxu0 %v2243_v7 }
 0x566   :  { %787 = vmatpush.msra.mxu0 %v2263_v12 }
 0x5dc   :  { %v381_v25 = vpop.f32.mrf.mxu0 }
 0x5dd   :  { %v384_v26 = vadd.f32 %v381_v25, %v361_v24 }
 0x5df   :  { %v385_v27 = vadd.f32 %v384_v26, %v2295_v22 }
 0x5e1   :  { %v1738_v28 = vmul.f32 -1.442695, %v385_v27 }
 0x5e3   :  { %1818 = vpow2.f32 %v1738_v28 }
 0x5e9   :  { %v1819_v29 = vpop.eup %1818 }
 0x5ea   :  { %v390_v30 = vadd.f32 1.0, %v1819_v29 }
 0x5ec   :  { %1820 = vrcp.f32 %v390_v30  ;;  %v402_v5 = vand.u32 2147483648, %v390_v30  ;;  %v400_v7 = vand.u32 2147483647, %v390_v30  ;;  %vm396_vm2 = vweird.f32 %v390_v30 }
 0x5ed   :  { %1822 = vtanh.f32 %v385_v27 }
 0x5ee   :  { %v403_v12 = vor.u32 1.1754944e-38, %v402_v5  ;;  %vm401_vm5 = vcmp.eq.f32.partialorder %v400_v7, 8.507059e+37 }
 0x5f2   :  { %v1821_v31 = vpop.eup %1820 }
 0x5f3   :  { %v392_v32 = vmul.f32 %v1821_v31, %v390_v30  ;;  %vm397_vm0 = vweird.f32 %v1821_v31  ;;  %v1823_v36 = vpop.eup %1822 }
 0x5f4   :  { %vm398_vm4 = vmor %vm396_vm2, %vm397_vm0 }
 0x5f5   :  { %v393_v33 = vsub.f32 1.0, %v392_v32 }
 0x5f7   :  { %v394_v6 = vmul.f32 %v1821_v31, %v393_v33 }
 0x5f9   :  { %v395_v34 = vadd.f32 %v1821_v31, %v394_v6 }
 0x5fb   :  { %v399_v35 = vsel %vm398_vm4, %v1821_v31, %v395_v34 }
 0x5fc   :  { %v404_v37 = vsel %vm401_vm5, %v403_v12, %v399_v35 }
 0x5fd   :  { %v406_v39 = vsel %vm2298_vm7, %v1823_v36, %v404_v37 }
 0x5fe   :  { %409 = vrot.lane.b32.xlu2 %v406_v39, %s2125_s3  ;;  %v407_v42 = vmul.f32 %v406_v39, %v349_v17  ;;  %v497_v17 = vld [vmem:[#allocation3 + $0x8] sm:$0x3] }
 0x658   :  { %v410_v40 = vpop.permute.xlu2 %409 }
 0x659   :  { %v412_v41 = vmul.f32 %v410_v40, %v406_v39 }
 0x65b   :  { %414 = vrot.lane.b32.xlu0 %v412_v41, %s2126_s0 }
 0x6cd   :  { %v415_v43 = vpop.permute.xlu0 %414 }
 0x6ce   :  { %v417_v44 = vadd.f32 %v415_v43, %v407_v42  ;;  %v849_v43 = vld [vmem:[%s2664_s6 + $0x18] sm:$0xff] }
 0x6cf   :  { %876 = vmatpush.msra.mxu2 %v849_v43 }
 0x6d0   :  { %1824 = vtanh.f32 %v417_v44 }
 0x6d6   :  { %v1825_v45 = vpop.eup %1824 }
 0x6d7   :  { %420 = vrot.lane.b32.xlu1 %v1825_v45, %s2125_s3  ;;  %v847_v45 = vld [vmem:[%s2664_s6 + $0x8] sm:$0xff] }
 0x749   :  { %v421_v46 = vpop.permute.xlu1 %420 }
 0x74a   :  { %v423_v47 = vmul.f32 %v421_v46, %v406_v39  ;;  %v846_v46 = vld [vmem:[%s2664_s6] sm:$0xff] }
 0x74c   :  { %425 = vrot.lane.b32.xlu2 %v423_v47, %s2126_s0 }
 0x7a6   :  { %v426_v48 = vpop.permute.xlu2 %425 }
 0x7a7   :  { %428 = vst.msk [vmem:[#allocation2 + $0x4] sm:$0x3] %vm291_vm11, %v426_v48  ;;  %1739 = vmatmul.msk.f32.vlgmr.msra.gmra.mxu3 %vm223_vm3, %v426_v48 }
 0x82a   :  { %v449_v50 = vpop.f32.mrf.mxu3 }
 0x82b   :  { %v452_v51 = vadd.f32 %v449_v50, %v429_v49  ;;  %v565_v49 = vld [vmem:[#allocation3 + $0xa] sm:$0x3] }
 0x82d   :  { %v453_v52 = vadd.f32 %v452_v51, %v2295_v22 }
 0x82f   :  { %v1740_v53 = vmul.f32 -1.442695, %v453_v52 }
 0x831   :  { %1826 = vpow2.f32 %v1740_v53 }
 0x837   :  { %v1827_v54 = vpop.eup %1826 }
 0x838   :  { %v458_v55 = vadd.f32 1.0, %v1827_v54  ;;  %v2372_v54 = vld [vmem:[%s2666_s8 + $0x1] ss:$0 sm:$0xff] }
 0x83a   :  { %1828 = vrcp.f32 %v458_v55  ;;  %v470_v59 = vand.u32 2147483648, %v458_v55  ;;  %v468_v61 = vand.u32 2147483647, %v458_v55  ;;  %vm464_vm8 = vweird.f32 %v458_v55 }
 0x83b   :  { %1830 = vtanh.f32 %v453_v52 }
 0x83c   :  { %v471_v63 = vor.u32 1.1754944e-38, %v470_v59  ;;  %vm469_vm10 = vcmp.eq.f32.partialorder %v468_v61, 8.507059e+37 }
 0x840   :  { %v1829_v56 = vpop.eup %1828 }
 0x841   :  { %v460_v57 = vmul.f32 %v1829_v56, %v458_v55  ;;  %vm465_vm6 = vweird.f32 %v1829_v56  ;;  %v1831_v1 = vpop.eup %1830 }
 0x842   :  { %vm466_vm9 = vmor %vm464_vm8, %vm465_vm6 }
 0x843   :  { %v461_v58 = vsub.f32 1.0, %v460_v57 }
 0x845   :  { %v462_v60 = vmul.f32 %v1829_v56, %v461_v58 }
 0x847   :  { %v463_v62 = vadd.f32 %v1829_v56, %v462_v60 }
 0x849   :  { %v467_v0 = vsel %vm466_vm9, %v1829_v56, %v463_v62 }
 0x84a   :  { %v472_v2 = vsel %vm469_vm10, %v471_v63, %v467_v0 }
 0x84b   :  { %v474_v3 = vsel %vm2298_vm7, %v1831_v1, %v472_v2 }
 0x84c   :  { %477 = vrot.lane.b32.xlu0 %v474_v3, %s2125_s3  ;;  %v475_v9 = vmul.f32 %v474_v3, %v417_v44  ;;  %v848_v44 = vld [vmem:[%s2664_s6 + $0x10] sm:$0xff] }
 0x84d   :  { %877 = vmatpush.msra.mxu2 %v848_v44 }
 0x84f   :  { %878 = vmatpush.msra.mxu2 %v847_v45 }
 0x851   :  { %879 = vmatpush.msra.mxu2 %v846_v46 }
 0x8be   :  { %v478_v4 = vpop.permute.xlu0 %477 }
 0x8bf   :  { %v480_v8 = vmul.f32 %v478_v4, %v474_v3 }
 0x8c1   :  { %482 = vrot.lane.b32.xlu1 %v480_v8, %s2126_s0 }
 0x933   :  { %v483_v10 = vpop.permute.xlu1 %482 }
 0x934   :  { %v485_v11 = vadd.f32 %v483_v10, %v475_v9 }
 0x936   :  { %1832 = vtanh.f32 %v485_v11 }
 0x93c   :  { %v1833_v13 = vpop.eup %1832 }
 0x93d   :  { %488 = vrot.lane.b32.xlu2 %v1833_v13, %s2125_s3 }
 0x997   :  { %v489_v14 = vpop.permute.xlu2 %488 }
 0x998   :  { %v491_v15 = vmul.f32 %v489_v14, %v474_v3 }
 0x99a   :  { %493 = vrot.lane.b32.xlu0 %v491_v15, %s2126_s0 }
 0xa0c   :  { %v494_v16 = vpop.permute.xlu0 %493 }
 0xa0d   :  { %496 = vst.msk [vmem:[#allocation2 + $0x6] sm:$0x3] %vm291_vm11, %v494_v16  ;;  %1741 = vmatmul.msk.f32.vlgmr.msrb.gmra.mxu0 %vm223_vm3, %v494_v16 }
 0xa14   :  { %v843_v48 = vld [vmem:[#allocation2] sm:$0xff] }
 0xa8a   :  { %v517_v19 = vpop.f32.mrf.mxu0 }
 0xa8b   :  { %v520_v20 = vadd.f32 %v517_v19, %v497_v17 }
 0xa8d   :  { %v521_v21 = vadd.f32 %v520_v20, %v2295_v22  ;;  %v2387_v20 = vld [vmem:[%s2665_s7 + $0x38] sm:$0xff] }
 0xa8e   :  { %911 = vmatpush.msra.mxu3 %v2387_v20  ;;  %978 = vmatpush.msrb.mxu1 %v2387_v20 }
 0xa8f   :  { %v1742_v23 = vmul.f32 -1.442695, %v521_v21  ;;  %1045 = vmatpush.msrb.mxu0 %v2387_v20 }
 0xa91   :  { %1834 = vpow2.f32 %v1742_v23  ;;  %v2399_v23 = vld [vmem:[%s2665_s7 + $0x28] sm:$0xff] }
 0xa97   :  { %v1835_v24 = vpop.eup %1834 }
 0xa98   :  { %v526_v25 = vadd.f32 1.0, %v1835_v24  ;;  %v2407_v24 = vld [vmem:[%s2665_s7 + $0x20] sm:$0xff] }
 0xa9a   :  { %1836 = vrcp.f32 %v526_v25  ;;  %v538_v29 = vand.u32 2147483648, %v526_v25  ;;  %v536_v31 = vand.u32 2147483647, %v526_v25  ;;  %vm532_vm13 = vweird.f32 %v526_v25 }
 0xa9b   :  { %1838 = vtanh.f32 %v521_v21  ;;  %v2392_v21 = vld [vmem:[%s2665_s7 + $0x30] sm:$0xff] }
 0xa9c   :  { %v539_v33 = vor.u32 1.1754944e-38, %v538_v29  ;;  %vm537_vm15 = vcmp.eq.f32.partialorder %v536_v31, 8.507059e+37  ;;  %912 = vmatpush.msra.mxu3 %v2392_v21  ;;  %979 = vmatpush.msrb.mxu1 %v2392_v21 }
 0xa9d   :  { %1046 = vmatpush.msrb.mxu0 %v2392_v21 }
 0xa9e   :  { %913 = vmatpush.msra.mxu3 %v2399_v23  ;;  %980 = vmatpush.msrb.mxu1 %v2399_v23 }
 0xa9f   :  { %1047 = vmatpush.msrb.mxu0 %v2399_v23 }
 0xaa0   :  { %v1837_v26 = vpop.eup %1836  ;;  %914 = vmatpush.msra.mxu3 %v2407_v24  ;;  %981 = vmatpush.msrb.mxu1 %v2407_v24 }
 0xaa1   :  { %v528_v27 = vmul.f32 %v1837_v26, %v526_v25  ;;  %vm533_vm12 = vweird.f32 %v1837_v26  ;;  %v1839_v6 = vpop.eup %1838  ;;  %1048 = vmatpush.msrb.mxu0 %v2407_v24 }
 0xaa2   :  { %vm534_vm14 = vmor %vm532_vm13, %vm533_vm12 }
 0xaa3   :  { %v529_v28 = vsub.f32 1.0, %v528_v27 }
 0xaa5   :  { %v530_v30 = vmul.f32 %v1837_v26, %v529_v28 }
 0xaa7   :  { %v531_v32 = vadd.f32 %v1837_v26, %v530_v30 }
 0xaa9   :  { %v535_v5 = vsel %vm534_vm14, %v1837_v26, %v531_v32  ;;  %v633_v26 = vld [vmem:[#allocation3 + $0xc] sm:$0x3] }
 0xaaa   :  { %v540_v7 = vsel %vm537_vm15, %v539_v33, %v535_v5 }
 0xaab   :  { %v542_v34 = vsel %vm2298_vm7, %v1839_v6, %v540_v7 }
 0xaac   :  { %545 = vrot.lane.b32.xlu1 %v542_v34, %s2125_s3  ;;  %v543_v36 = vmul.f32 %v542_v34, %v485_v11 }
 0xb1e   :  { %v546_v12 = vpop.permute.xlu1 %545 }
 0xb1f   :  { %v548_v35 = vmul.f32 %v546_v12, %v542_v34 }
 0xb21   :  { %550 = vrot.lane.b32.xlu2 %v548_v35, %s2126_s0 }
 0xb7b   :  { %v551_v37 = vpop.permute.xlu2 %550 }
 0xb7c   :  { %v553_v39 = vadd.f32 %v551_v37, %v543_v36 }
 0xb7e   :  { %1840 = vtanh.f32 %v553_v39 }
 0xb84   :  { %v1841_v40 = vpop.eup %1840 }
 0xb85   :  { %556 = vrot.lane.b32.xlu0 %v1841_v40, %s2125_s3 }
 0xbf7   :  { %v557_v41 = vpop.permute.xlu0 %556 }
 0xbf8   :  { %v559_v42 = vmul.f32 %v557_v41, %v542_v34 }
 0xbfa   :  { %561 = vrot.lane.b32.xlu1 %v559_v42, %s2126_s0 }
 0xc6c   :  { %v562_v47 = vpop.permute.xlu1 %561 }
 0xc6d   :  { %564 = vst.msk [vmem:[#allocation2 + $0x8] sm:$0x3] %vm291_vm11, %v562_v47  ;;  %1743 = vmatmul.msk.f32.vlgmr.msrb.gmra.mxu2 %vm223_vm3, %v562_v47 }
 0xc75   :  { %1752 = vmatmul.msk.f32.vlgmr.msra.gmra.mxu2 %vm223_vm3, %v843_v48 }
 0xcf0   :  { %v585_v50 = vpop.f32.mrf.mxu2 }
 0xcf1   :  { %v588_v51 = vadd.f32 %v585_v50, %v565_v49 }
 0xcf3   :  { %v589_v52 = vadd.f32 %v588_v51, %v2295_v22 }
 0xcf5   :  { %v1744_v53 = vmul.f32 -1.442695, %v589_v52 }
 0xcf7   :  { %1842 = vpow2.f32 %v1744_v53 }
 0xcf8   :  { %v881_v55 = vpop.f32.mrf.mxu2 }
 0xcf9   :  { %v882_v56 = vadd.f32 %v2372_v54, %v881_v55 }
 0xcfb   :  { %890 = vst [vmem:[#allocation3] sm:$0xff] %v882_v56 }
 0xcfd   :  { %v1843_v57 = vpop.eup %1842 }
 0xcfe   :  { %v594_v58 = vadd.f32 1.0, %v1843_v57 }
 0xd00   :  { %1844 = vrcp.f32 %v594_v58  ;;  %v606_v62 = vand.u32 2147483648, %v594_v58  ;;  %v604_v0 = vand.u32 2147483647, %v594_v58  ;;  %vm600_vm2 = vweird.f32 %v594_v58 }
 0xd01   :  { %1846 = vtanh.f32 %v589_v52 }
 0xd02   :  { %v607_v2 = vor.u32 1.1754944e-38, %v606_v62  ;;  %vm605_vm5 = vcmp.eq.f32.partialorder %v604_v0, 8.507059e+37  ;;  %v898_v31 = vld [vmem:[#allocation3] sm:$0x3] }
 0xd06   :  { %v1845_v59 = vpop.eup %1844 }
 0xd07   :  { %v596_v60 = vmul.f32 %v1845_v59, %v594_v58  ;;  %vm601_vm0 = vweird.f32 %v1845_v59  ;;  %v1847_v4 = vpop.eup %1846 }
 0xd08   :  { %vm602_vm4 = vmor %vm600_vm2, %vm601_vm0 }
 0xd09   :  { %v597_v61 = vsub.f32 1.0, %v596_v60 }
 0xd0b   :  { %v598_v63 = vmul.f32 %v1845_v59, %v597_v61 }
 0xd0d   :  { %v599_v1 = vadd.f32 %v1845_v59, %v598_v63 }
 0xd0f   :  { %v603_v3 = vsel %vm602_vm4, %v1845_v59, %v599_v1 }
 0xd10   :  { %v608_v8 = vsel %vm605_vm5, %v607_v2, %v603_v3 }
 0xd11   :  { %v610_v9 = vsel %vm2298_vm7, %v1847_v4, %v608_v8 }
 0xd12   :  { %613 = vrot.lane.b32.xlu2 %v610_v9, %s2125_s3  ;;  %v611_v13 = vmul.f32 %v610_v9, %v553_v39 }
 0xd6c   :  { %v614_v10 = vpop.permute.xlu2 %613 }
 0xd6d   :  { %v616_v11 = vmul.f32 %v614_v10, %v610_v9 }
 0xd6f   :  { %618 = vrot.lane.b32.xlu0 %v616_v11, %s2126_s0 }
 0xde1   :  { %v619_v14 = vpop.permute.xlu0 %618 }
 0xde2   :  { %v2379_v15 = vadd.f32 %v619_v14, %v611_v13 }
 0xde4   :  { %1848 = vtanh.f32 %v2379_v15 }
 0xdea   :  { %v1849_v16 = vpop.eup %1848 }
 0xdeb   :  { %624 = vrot.lane.b32.xlu1 %v1849_v16, %s2125_s3 }
 0xe5d   :  { %v625_v17 = vpop.permute.xlu1 %624 }
 0xe5e   :  { %v627_v19 = vmul.f32 %v625_v17, %v610_v9 }
 0xe60   :  { %629 = vrot.lane.b32.xlu2 %v627_v19, %s2126_s0  ;;  %v701_v19 = vld [vmem:[#allocation3 + $0xe] sm:$0x3] }
 0xeba   :  { %v630_v25 = vpop.permute.xlu2 %629 }
 0xebb   :  { %632 = vst.msk [vmem:[#allocation2 + $0xa] sm:$0x3] %vm291_vm11, %v630_v25  ;;  %1745 = vmatmul.msk.f32.vlgmr.msrb.gmra.mxu3 %vm223_vm3, %v630_v25 }
 0xebc   :  { %1112 = vmatpush.msrb.mxu3 %v2387_v20 }
 0xebe   :  { %1113 = vmatpush.msrb.mxu3 %v2392_v21 }
 0xec0   :  { %1114 = vmatpush.msrb.mxu3 %v2399_v23 }
 0xec2   :  { %1115 = vmatpush.msrb.mxu3 %v2407_v24 }
 0xec3   :  { %1759 = vmatmul.msk.f32.vlgmr.msra.gmra.mxu3 %vm223_vm3, %v2288_v18 }
 0xec4   :  { %1313 = vmatpush.msra.mxu3 %v2387_v20 }
 0xec6   :  { %1314 = vmatpush.msra.mxu3 %v2392_v21 }
 0xec8   :  { %1315 = vmatpush.msra.mxu3 %v2399_v23 }
 0xeca   :  { %1316 = vmatpush.msra.mxu3 %v2407_v24 }
 0xf3e   :  { %v653_v27 = vpop.f32.mrf.mxu3 }
 0xf3f   :  { %v656_v28 = vadd.f32 %v653_v27, %v633_v26 }
 0xf41   :  { %v657_v29 = vadd.f32 %v656_v28, %v2295_v22 }
 0xf43   :  { %v1746_v30 = vmul.f32 -1.442695, %v657_v29 }
 0xf45   :  { %1850 = vpow2.f32 %v1746_v30 }
 0xf46   :  { %v916_v32 = vpop.f32.mrf.mxu3 }
 0xf47   :  { %v919_v33 = vadd.f32 %v916_v32, %v898_v31 }
 0xf49   :  { %v1760_v5 = vmul.f32 -1.442695, %v919_v33 }
 0xf4b   :  { %v1851_v6 = vpop.eup %1850  ;;  %1852 = vpow2.f32 %v1760_v5 }
 0xf4c   :  { %v662_v7 = vadd.f32 1.0, %v1851_v6 }
 0xf4e   :  { %1854 = vrcp.f32 %v662_v7  ;;  %v674_v39 = vand.u32 2147483648, %v662_v7  ;;  %v672_v41 = vand.u32 2147483647, %v662_v7  ;;  %vm668_vm8 = vweird.f32 %v662_v7 }
 0xf50   :  { %v675_v45 = vor.u32 1.1754944e-38, %v674_v39  ;;  %vm673_vm10 = vcmp.eq.f32.partialorder %v672_v41, 8.507059e+37 }
 0xf51   :  { %v1853_v34 = vpop.eup %1852 }
 0xf52   :  { %v924_v12 = vadd.f32 1.0, %v1853_v34 }
 0xf54   :  { %v1855_v35 = vpop.eup %1854  ;;  %1856 = vrcp.f32 %v924_v12  ;;  %v936_v50 = vand.u32 2147483648, %v924_v12  ;;  %v934_v53 = vand.u32 2147483647, %v924_v12  ;;  %vm930_vm13 = vweird.f32 %v924_v12 }
 0xf55   :  { %v664_v36 = vmul.f32 %v1855_v35, %v662_v7  ;;  %1858 = vtanh.f32 %v657_v29  ;;  %vm669_vm6 = vweird.f32 %v1855_v35  ;;  %v963_v29 = vld [vmem:[#allocation3 + $0x2] sm:$0x3] }
 0xf56   :  { %vm670_vm9 = vmor %vm668_vm8, %vm669_vm6  ;;  %1860 = vtanh.f32 %v919_v33  ;;  %v937_v56 = vor.u32 1.1754944e-38, %v936_v50  ;;  %vm935_vm15 = vcmp.eq.f32.partialorder %v934_v53, 8.507059e+37 }
 0xf57   :  { %v665_v37 = vsub.f32 1.0, %v664_v36 }
 0xf59   :  { %v666_v40 = vmul.f32 %v1855_v35, %v665_v37 }
 0xf5a   :  { %v1857_v42 = vpop.eup %1856 }
 0xf5b   :  { %v667_v43 = vadd.f32 %v1855_v35, %v666_v40  ;;  %v926_v44 = vmul.f32 %v1857_v42, %v924_v12  ;;  %v1859_v48 = vpop.eup %1858  ;;  %vm931_vm12 = vweird.f32 %v1857_v42 }
 0xf5c   :  { %vm932_vm14 = vmor %vm930_vm13, %vm931_vm12  ;;  %v1861_v58 = vpop.eup %1860 }
 0xf5d   :  { %v671_v46 = vsel %vm670_vm9, %v1855_v35, %v667_v43  ;;  %v927_v47 = vsub.f32 1.0, %v926_v44 }
 0xf5e   :  { %v676_v49 = vsel %vm673_vm10, %v675_v45, %v671_v46 }
 0xf5f   :  { %v678_v51 = vsel %vm2298_vm7, %v1859_v48, %v676_v49  ;;  %v928_v52 = vmul.f32 %v1857_v42, %v927_v47 }
 0xf60   :  { %681 = vrot.lane.b32.xlu0 %v678_v51, %s2125_s3  ;;  %v679_v1 = vmul.f32 %v678_v51, %v2379_v15 }
 0xf61   :  { %v929_v55 = vadd.f32 %v1857_v42, %v928_v52 }
 0xf63   :  { %v933_v57 = vsel %vm932_vm14, %v1857_v42, %v929_v55 }
 0xf64   :  { %v938_v59 = vsel %vm935_vm15, %v937_v56, %v933_v57 }
 0xf65   :  { %v940_v60 = vsel %vm2298_vm7, %v1861_v58, %v938_v59 }
 0xf66   :  { %943 = vrot.lane.b32.xlu1 %v940_v60, %s2125_s3  ;;  %v941_v8 = vmul.f32 %v2288_v18, %v940_v60 }
 0xfd2   :  { %v682_v61 = vpop.permute.xlu0 %681 }
 0xfd3   :  { %v684_v62 = vmul.f32 %v682_v61, %v678_v51 }
 0xfd5   :  { %686 = vrot.lane.b32.xlu2 %v684_v62, %s2126_s0 }
 0xfd8   :  { %v944_v63 = vpop.permute.xlu1 %943 }
 0xfd9   :  { %v946_v0 = vmul.f32 %v944_v63, %v940_v60 }
 0xfdb   :  { %948 = vrot.lane.b32.xlu0 %v946_v0, %s2126_s0 }
0x102f   :  { %v687_v2 = vpop.permute.xlu2 %686 }
0x1030   :  { %v2438_v3 = vadd.f32 %v687_v2, %v679_v1 }
0x1032   :  { %1862 = vtanh.f32 %v2438_v3 }
0x1038   :  { %v1863_v4 = vpop.eup %1862 }
0x1039   :  { %692 = vrot.lane.b32.xlu1 %v1863_v4, %s2125_s3 }
0x104d   :  { %v949_v9 = vpop.permute.xlu0 %948 }
0x104e   :  { %v2443_v10 = vadd.f32 %v949_v9, %v941_v8 }
0x1050   :  { %1864 = vtanh.f32 %v2443_v10 }
0x1056   :  { %v1865_v11 = vpop.eup %1864 }
0x1057   :  { %954 = vrot.lane.b32.xlu2 %v1865_v11, %s2125_s3 }
0x10ab   :  { %v693_v13 = vpop.permute.xlu1 %692 }
0x10ac   :  { %v695_v14 = vmul.f32 %v693_v13, %v678_v51 }
0x10ae   :  { %697 = vrot.lane.b32.xlu0 %v695_v14, %s2126_s0 }
0x10b1   :  { %v955_v15 = vpop.permute.xlu2 %954 }
0x10b2   :  { %v957_v16 = vmul.f32 %v955_v15, %v940_v60 }
0x10b4   :  { %959 = vrot.lane.b32.xlu1 %v957_v16, %s2126_s0 }
0x1120   :  { %v698_v17 = vpop.permute.xlu0 %697 }
0x1121   :  { %700 = vst.msk [vmem:[#allocation2 + $0xc] sm:$0x3] %vm291_vm11, %v698_v17  ;;  %1747 = vmatmul.msk.f32.vlgmr.msra.gmra.mxu1 %vm223_vm3, %v698_v17 }
0x1122   :  { %1179 = vmatpush.msra.mxu1 %v2387_v20 }
0x1124   :  { %1180 = vmatpush.msra.mxu1 %v2392_v21 }
0x1126   :  { %v960_v18 = vpop.permute.xlu1 %959  ;;  %1181 = vmatpush.msra.mxu1 %v2399_v23 }
0x1127   :  { %962 = vst.msk [vmem:[#allocation2] sm:$0x3] %vm291_vm11, %v960_v18 }
0x1128   :  { %1182 = vmatpush.msra.mxu1 %v2407_v24 }
0x1129   :  { %1761 = vmatmul.msk.f32.vlgmr.msrb.gmra.mxu1 %vm223_vm3, %v960_v18 }
0x112a   :  { %1380 = vmatpush.msrb.mxu1 %v2387_v20 }
0x112c   :  { %1381 = vmatpush.msrb.mxu1 %v2392_v21 }
0x112e   :  { %1382 = vmatpush.msrb.mxu1 %v2399_v23 }
0x1130   :  { %1383 = vmatpush.msrb.mxu1 %v2407_v24 }
0x119e   :  { %v721_v25 = vpop.f32.mrf.mxu1 }
0x119f   :  { %v724_v26 = vadd.f32 %v721_v25, %v701_v19 }
0x11a1   :  { %v725_v27 = vadd.f32 %v724_v26, %v2295_v22  ;;  %v1030_v26 = vld [vmem:[#allocation3 + $0x4] sm:$0x3] }
0x11a3   :  { %v1748_v28 = vmul.f32 -1.442695, %v725_v27 }
0x11a5   :  { %1866 = vpow2.f32 %v1748_v28 }
0x11a6   :  { %v983_v30 = vpop.f32.mrf.mxu1 }
0x11a7   :  { %v986_v31 = vadd.f32 %v983_v30, %v963_v29 }
0x11a9   :  { %v1762_v32 = vmul.f32 -1.442695, %v986_v31 }
0x11ab   :  { %v1867_v33 = vpop.eup %1866  ;;  %1868 = vpow2.f32 %v1762_v32 }
0x11ac   :  { %v730_v5 = vadd.f32 1.0, %v1867_v33 }
0x11ae   :  { %1870 = vrcp.f32 %v730_v5  ;;  %v742_v36 = vand.u32 2147483648, %v730_v5  ;;  %v740_v39 = vand.u32 2147483647, %v730_v5  ;;  %vm736_vm2 = vweird.f32 %v730_v5 }
0x11b0   :  { %v743_v43 = vor.u32 1.1754944e-38, %v742_v36  ;;  %vm741_vm5 = vcmp.eq.f32.partialorder %v740_v39, 8.507059e+37 }
0x11b1   :  { %v1869_v6 = vpop.eup %1868 }
0x11b2   :  { %v991_v7 = vadd.f32 1.0, %v1869_v6 }
0x11b4   :  { %v1871_v34 = vpop.eup %1870  ;;  %1872 = vrcp.f32 %v991_v7  ;;  %v1003_v48 = vand.u32 2147483648, %v991_v7  ;;  %v1001_v51 = vand.u32 2147483647, %v991_v7  ;;  %vm997_vm8 = vweird.f32 %v991_v7 }
0x11b5   :  { %v732_v12 = vmul.f32 %v1871_v34, %v730_v5  ;;  %1874 = vtanh.f32 %v725_v27  ;;  %vm737_vm0 = vweird.f32 %v1871_v34 }
0x11b6   :  { %vm738_vm4 = vmor %vm736_vm2, %vm737_vm0  ;;  %1876 = vtanh.f32 %v986_v31  ;;  %v1004_v53 = vor.u32 1.1754944e-38, %v1003_v48  ;;  %vm1002_vm10 = vcmp.eq.f32.partialorder %v1001_v51, 8.507059e+37 }
0x11b7   :  { %v733_v35 = vsub.f32 1.0, %v732_v12 }
0x11b9   :  { %v734_v37 = vmul.f32 %v1871_v34, %v733_v35 }
0x11ba   :  { %v1873_v40 = vpop.eup %1872 }
0x11bb   :  { %v735_v41 = vadd.f32 %v1871_v34, %v734_v37  ;;  %v993_v42 = vmul.f32 %v1873_v40, %v991_v7  ;;  %v1875_v46 = vpop.eup %1874  ;;  %vm998_vm6 = vweird.f32 %v1873_v40 }
0x11bc   :  { %vm999_vm9 = vmor %vm997_vm8, %vm998_vm6  ;;  %v1877_v56 = vpop.eup %1876 }
0x11bd   :  { %v739_v44 = vsel %vm738_vm4, %v1871_v34, %v735_v41  ;;  %v994_v45 = vsub.f32 1.0, %v993_v42 }
0x11be   :  { %v744_v47 = vsel %vm741_vm5, %v743_v43, %v739_v44 }
0x11bf   :  { %v746_v49 = vsel %vm2298_vm7, %v1875_v46, %v744_v47  ;;  %v995_v50 = vmul.f32 %v1873_v40, %v994_v45  ;;  %v1097_v45 = vld [vmem:[#allocation3 + $0x6] sm:$0x3] }
0x11c0   :  { %749 = vrot.lane.b32.xlu2 %v746_v49, %s2125_s3  ;;  %v747_v63 = vmul.f32 %v746_v49, %v2438_v3 }
0x11c1   :  { %v996_v52 = vadd.f32 %v1873_v40, %v995_v50 }
0x11c3   :  { %v1000_v55 = vsel %vm999_vm9, %v1873_v40, %v996_v52 }
0x11c4   :  { %v1005_v57 = vsel %vm1002_vm10, %v1004_v53, %v1000_v55 }
0x11c5   :  { %v1007_v58 = vsel %vm2298_vm7, %v1877_v56, %v1005_v57 }
0x11c6   :  { %1010 = vrot.lane.b32.xlu0 %v1007_v58, %s2125_s3  ;;  %v1008_v2 = vmul.f32 %v1007_v58, %v2443_v10 }
0x121a   :  { %v750_v59 = vpop.permute.xlu2 %749 }
0x121b   :  { %v752_v60 = vmul.f32 %v750_v59, %v746_v49 }
0x121d   :  { %754 = vrot.lane.b32.xlu1 %v752_v60, %s2126_s0 }
0x1238   :  { %v1011_v61 = vpop.permute.xlu0 %1010 }
0x1239   :  { %v1013_v62 = vmul.f32 %v1011_v61, %v1007_v58 }
0x123b   :  { %1015 = vrot.lane.b32.xlu2 %v1013_v62, %s2126_s0 }
0x128f   :  { %v755_v0 = vpop.permute.xlu1 %754 }
0x1290   :  { %v2471_v1 = vadd.f32 %v755_v0, %v747_v63 }
0x1292   :  { %1878 = vtanh.f32 %v2471_v1 }
0x1295   :  { %v1016_v4 = vpop.permute.xlu2 %1015 }
0x1296   :  { %v1018_v8 = vadd.f32 %v1016_v4, %v1008_v2 }
0x1298   :  { %v1879_v9 = vpop.eup %1878  ;;  %1880 = vtanh.f32 %v1018_v8 }
0x1299   :  { %760 = vrot.lane.b32.xlu0 %v1879_v9, %s2125_s3 }
0x129e   :  { %v1881_v11 = vpop.eup %1880 }
0x129f   :  { %1021 = vrot.lane.b32.xlu1 %v1881_v11, %s2125_s3 }
0x130b   :  { %v761_v13 = vpop.permute.xlu0 %760 }
0x130c   :  { %v763_v14 = vmul.f32 %v761_v13, %v746_v49 }
0x130e   :  { %765 = vrot.lane.b32.xlu2 %v763_v14, %s2126_s0 }
0x1311   :  { %v1022_v3 = vpop.permute.xlu1 %1021 }
0x1312   :  { %v1024_v15 = vmul.f32 %v1022_v3, %v1007_v58 }
0x1314   :  { %1026 = vrot.lane.b32.xlu0 %v1024_v15, %s2126_s0 }
0x1368   :  { %v766_v16 = vpop.permute.xlu2 %765 }
0x1369   :  { %768 = vst.msk [vmem:[#allocation2 + $0xe] sm:$0x3] %vm291_vm11, %v766_v16  ;;  %1749 = vmatmul.msk.f32.vlgmr.msra.gmra.mxu0 %vm223_vm3, %v766_v16 }
0x136a   :  { %1246 = vmatpush.msra.mxu0 %v2387_v20 }
0x136c   :  { %1247 = vmatpush.msra.mxu0 %v2392_v21 }
0x136e   :  { %1248 = vmatpush.msra.mxu0 %v2399_v23 }
0x1370   :  { %v844_v10 = vld [vmem:[#allocation2 + $0x8] sm:$0xff]  ;;  %1249 = vmatpush.msra.mxu0 %v2407_v24 }
0x1371   :  { %1753 = vmatmul.msk.f32.gmra.mxu2 %vm223_vm3, %v844_v10 }
0x1386   :  { %v1027_v17 = vpop.permute.xlu0 %1026 }
0x1387   :  { %1029 = vst.msk [vmem:[#allocation2 + $0x2] sm:$0x3] %vm291_vm11, %v1027_v17  ;;  %1763 = vmatmul.msk.f32.vlgmr.msrb.gmra.mxu0 %vm223_vm3, %v1027_v17 }
0x1388   :  { %1447 = vmatpush.msrb.mxu0 %v2387_v20 }
0x138a   :  { %1448 = vmatpush.msrb.mxu0 %v2392_v21 }
0x138c   :  { %1449 = vmatpush.msrb.mxu0 %v2399_v23 }
0x138e   :  { %1450 = vmatpush.msrb.mxu0 %v2407_v24 }
0x13e6   :  { %v2493_v25 = vpop.f32.mrf.mxu0 }
0x13f4   :  { %v884_v18 = vpop.f32.mrf.mxu2 }
0x13f5   :  { %v885_v19 = vadd.f32 %v2372_v54, %v884_v18 }
0x13f7   :  { %891 = vst [vmem:[#allocation3 + $0x8] sm:$0xff] %v885_v19 }
0x13fe   :  { %v1164_v15 = vld [vmem:[#allocation3 + $0x8] sm:$0x3] }
0x1404   :  { %v1050_v27 = vpop.f32.mrf.mxu0 }
0x1405   :  { %v1053_v28 = vadd.f32 %v1050_v27, %v1030_v26 }
0x1407   :  { %v1764_v29 = vmul.f32 -1.442695, %v1053_v28 }
0x1409   :  { %1882 = vpow2.f32 %v1764_v29 }
0x140f   :  { %v1883_v30 = vpop.eup %1882 }
0x1410   :  { %v1058_v31 = vadd.f32 1.0, %v1883_v30 }
0x1412   :  { %1884 = vrcp.f32 %v1058_v31  ;;  %v1070_v23 = vand.u32 2147483648, %v1058_v31  ;;  %v1068_v33 = vand.u32 2147483647, %v1058_v31  ;;  %vm1064_vm13 = vweird.f32 %v1058_v31 }
0x1413   :  { %1886 = vtanh.f32 %v1053_v28 }
0x1414   :  { %v1071_v5 = vor.u32 1.1754944e-38, %v1070_v23  ;;  %vm1069_vm15 = vcmp.eq.f32.partialorder %v1068_v33, 8.507059e+37 }
0x1418   :  { %v1885_v20 = vpop.eup %1884 }
0x1419   :  { %v1060_v21 = vmul.f32 %v1885_v20, %v1058_v31  ;;  %vm1065_vm12 = vweird.f32 %v1885_v20  ;;  %v1887_v7 = vpop.eup %1886 }
0x141a   :  { %vm1066_vm14 = vmor %vm1064_vm13, %vm1065_vm12 }
0x141b   :  { %v1061_v32 = vsub.f32 1.0, %v1060_v21 }
0x141d   :  { %v1062_v24 = vmul.f32 %v1885_v20, %v1061_v32 }
0x141f   :  { %v1063_v54 = vadd.f32 %v1885_v20, %v1062_v24 }
0x1421   :  { %v1067_v6 = vsel %vm1066_vm14, %v1885_v20, %v1063_v54 }
0x1422   :  { %v1072_v34 = vsel %vm1069_vm15, %v1071_v5, %v1067_v6 }
0x1423   :  { %v1074_v12 = vsel %vm2298_vm7, %v1887_v7, %v1072_v34 }
0x1424   :  { %1077 = vrot.lane.b32.xlu1 %v1074_v12, %s2125_s3  ;;  %v1075_v37 = vmul.f32 %v1074_v12, %v1018_v8 }
0x1496   :  { %v1078_v35 = vpop.permute.xlu1 %1077 }
0x1497   :  { %v1080_v36 = vmul.f32 %v1078_v35, %v1074_v12 }
0x1499   :  { %1082 = vrot.lane.b32.xlu2 %v1080_v36, %s2126_s0 }
0x14f3   :  { %v1083_v39 = vpop.permute.xlu2 %1082 }
0x14f4   :  { %v1085_v40 = vadd.f32 %v1083_v39, %v1075_v37  ;;  %v1231_v39 = vld [vmem:[#allocation3 + $0xa] sm:$0x3] }
0x14f6   :  { %1888 = vtanh.f32 %v1085_v40 }
0x14fc   :  { %v1889_v41 = vpop.eup %1888 }
0x14fd   :  { %1088 = vrot.lane.b32.xlu0 %v1889_v41, %s2125_s3 }
0x156f   :  { %v1089_v42 = vpop.permute.xlu0 %1088 }
0x1570   :  { %v1091_v43 = vmul.f32 %v1089_v42, %v1074_v12 }
0x1572   :  { %1093 = vrot.lane.b32.xlu1 %v1091_v43, %s2126_s0 }
0x15e4   :  { %v1094_v44 = vpop.permute.xlu1 %1093 }
0x15e5   :  { %1096 = vst.msk [vmem:[#allocation2 + $0x4] sm:$0x3] %vm291_vm11, %v1094_v44  ;;  %1765 = vmatmul.msk.f32.vlgmr.msrb.gmra.mxu3 %vm223_vm3, %v1094_v44 }
0x1668   :  { %v1117_v46 = vpop.f32.mrf.mxu3 }
0x1669   :  { %v1120_v47 = vadd.f32 %v1117_v46, %v1097_v45 }
0x166b   :  { %v1766_v48 = vmul.f32 -1.442695, %v1120_v47 }
0x166d   :  { %1890 = vpow2.f32 %v1766_v48 }
0x1673   :  { %v1891_v49 = vpop.eup %1890 }
0x1674   :  { %v1125_v50 = vadd.f32 1.0, %v1891_v49 }
0x1676   :  { %1892 = vrcp.f32 %v1125_v50  ;;  %v1137_v55 = vand.u32 2147483648, %v1125_v50  ;;  %v1135_v57 = vand.u32 2147483647, %v1125_v50  ;;  %vm1131_vm2 = vweird.f32 %v1125_v50 }
0x1677   :  { %1894 = vtanh.f32 %v1120_v47 }
0x1678   :  { %v1138_v59 = vor.u32 1.1754944e-38, %v1137_v55  ;;  %vm1136_vm5 = vcmp.eq.f32.partialorder %v1135_v57, 8.507059e+37 }
0x167c   :  { %v1893_v51 = vpop.eup %1892 }
0x167d   :  { %v1127_v52 = vmul.f32 %v1893_v51, %v1125_v50  ;;  %vm1132_vm0 = vweird.f32 %v1893_v51  ;;  %v1895_v61 = vpop.eup %1894 }
0x167e   :  { %vm1133_vm4 = vmor %vm1131_vm2, %vm1132_vm0 }
0x167f   :  { %v1128_v53 = vsub.f32 1.0, %v1127_v52 }
0x1681   :  { %v1129_v56 = vmul.f32 %v1893_v51, %v1128_v53 }
0x1683   :  { %v1130_v58 = vadd.f32 %v1893_v51, %v1129_v56 }
0x1685   :  { %v1134_v60 = vsel %vm1133_vm4, %v1893_v51, %v1130_v58 }
0x1686   :  { %v1139_v62 = vsel %vm1136_vm5, %v1138_v59, %v1134_v60 }
0x1687   :  { %v1141_v63 = vsel %vm2298_vm7, %v1895_v61, %v1139_v62 }
0x1688   :  { %1144 = vrot.lane.b32.xlu2 %v1141_v63, %s2125_s3  ;;  %v1142_v4 = vmul.f32 %v1141_v63, %v1085_v40 }
0x16e2   :  { %v1145_v0 = vpop.permute.xlu2 %1144 }
0x16e3   :  { %v1147_v2 = vmul.f32 %v1145_v0, %v1141_v63 }
0x16e5   :  { %1149 = vrot.lane.b32.xlu0 %v1147_v2, %s2126_s0 }
0x1757   :  { %v1150_v8 = vpop.permute.xlu0 %1149 }
0x1758   :  { %v1152_v9 = vadd.f32 %v1150_v8, %v1142_v4  ;;  %v1559_v4 = vld [vmem:[%s2669_s11 + $0x18] sm:$0xff]  ;;  %v1558_v8 = vld [vmem:[%s2669_s11 + $0x10] sm:$0xff] }
0x1759   :  { %1576 = vmatpush.msrb.mxu3 %v1559_v4 }
0x175a   :  { %1896 = vtanh.f32 %v1152_v9 }
0x175b   :  { %1577 = vmatpush.msrb.mxu3 %v1558_v8 }
0x1760   :  { %v1897_v11 = vpop.eup %1896 }
0x1761   :  { %1155 = vrot.lane.b32.xlu1 %v1897_v11, %s2125_s3  ;;  %v1556_v11 = vld [vmem:[%s2669_s11] sm:$0xff] }
0x17d3   :  { %v1156_v13 = vpop.permute.xlu1 %1155 }
0x17d4   :  { %v1158_v14 = vmul.f32 %v1156_v13, %v1141_v63 }
0x17d6   :  { %1160 = vrot.lane.b32.xlu2 %v1158_v14, %s2126_s0 }
0x1830   :  { %v1161_v3 = vpop.permute.xlu2 %1160 }
0x1831   :  { %1163 = vst.msk [vmem:[#allocation2 + $0x6] sm:$0x3] %vm291_vm11, %v1161_v3  ;;  %1767 = vmatmul.msk.f32.vlgmr.msra.gmra.mxu1 %vm223_vm3, %v1161_v3  ;;  %v1298_v3 = vld [vmem:[#allocation3 + $0xc] sm:$0x3] }
0x1838   :  { %v2542_v14 = vld [vmem:[#allocation2] sm:$0xff] }
0x18ae   :  { %v1184_v16 = vpop.f32.mrf.mxu1 }
0x18af   :  { %v1187_v10 = vadd.f32 %v1184_v16, %v1164_v15 }
0x18b1   :  { %v1768_v17 = vmul.f32 -1.442695, %v1187_v10 }
0x18b3   :  { %1898 = vpow2.f32 %v1768_v17 }
0x18b9   :  { %v1899_v18 = vpop.eup %1898 }
0x18ba   :  { %v1192_v19 = vadd.f32 1.0, %v1899_v18 }
0x18bc   :  { %1900 = vrcp.f32 %v1192_v19  ;;  %v1204_v29 = vand.u32 2147483648, %v1192_v19  ;;  %v1202_v31 = vand.u32 2147483647, %v1192_v19  ;;  %vm1198_vm8 = vweird.f32 %v1192_v19 }
0x18bd   :  { %1902 = vtanh.f32 %v1187_v10 }
0x18be   :  { %v1205_v21 = vor.u32 1.1754944e-38, %v1204_v29  ;;  %vm1203_vm10 = vcmp.eq.f32.partialorder %v1202_v31, 8.507059e+37 }
0x18c2   :  { %v1901_v26 = vpop.eup %1900 }
0x18c3   :  { %v1194_v27 = vmul.f32 %v1901_v26, %v1192_v19  ;;  %vm1199_vm6 = vweird.f32 %v1901_v26  ;;  %v1903_v23 = vpop.eup %1902 }
0x18c4   :  { %vm1200_vm9 = vmor %vm1198_vm8, %vm1199_vm6 }
0x18c5   :  { %v1195_v28 = vsub.f32 1.0, %v1194_v27 }
0x18c7   :  { %v1196_v30 = vmul.f32 %v1901_v26, %v1195_v28 }
0x18c9   :  { %v1197_v20 = vadd.f32 %v1901_v26, %v1196_v30 }
0x18cb   :  { %v1201_v32 = vsel %vm1200_vm9, %v1901_v26, %v1197_v20 }
0x18cc   :  { %v1206_v24 = vsel %vm1203_vm10, %v1205_v21, %v1201_v32 }
0x18cd   :  { %v1208_v33 = vsel %vm2298_vm7, %v1903_v23, %v1206_v24 }
0x18ce   :  { %1211 = vrot.lane.b32.xlu0 %v1208_v33, %s2125_s3  ;;  %v1209_v6 = vmul.f32 %v1208_v33, %v1152_v9  ;;  %v1557_v9 = vld [vmem:[%s2669_s11 + $0x8] sm:$0xff]  ;;  %s1705_s11 = sshll.u32 %s2673_s15, 4  ;;  %s1706_s11 = int_to_ptr.hbm [resolvable:$true] %s1705_s11 }
0x18cf   :  { %1578 = vmatpush.msrb.mxu3 %v1557_v9 }
0x18d1   :  { %1579 = vmatpush.msrb.mxu3 %v1556_v11 }
0x1940   :  { %v1212_v54 = vpop.permute.xlu0 %1211 }
0x1941   :  { %v1214_v5 = vmul.f32 %v1212_v54, %v1208_v33 }
0x1943   :  { %1216 = vrot.lane.b32.xlu1 %v1214_v5, %s2126_s0 }
0x19b5   :  { %v1217_v7 = vpop.permute.xlu1 %1216 }
0x19b6   :  { %v1219_v34 = vadd.f32 %v1217_v7, %v1209_v6 }
0x19b8   :  { %1904 = vtanh.f32 %v1219_v34 }
0x19be   :  { %v1905_v12 = vpop.eup %1904 }
0x19bf   :  { %1222 = vrot.lane.b32.xlu2 %v1905_v12, %s2125_s3 }
0x1a19   :  { %v1223_v35 = vpop.permute.xlu2 %1222 }
0x1a1a   :  { %v1225_v36 = vmul.f32 %v1223_v35, %v1208_v33  ;;  %v769_v33 = vld [vmem:[#allocation3 + $0x10] sm:$0x3] }
0x1a1b   :  { %v792_v54 = vadd.f32 %v2493_v25, %v769_v33 }
0x1a1c   :  { %1227 = vrot.lane.b32.xlu0 %v1225_v36, %s2126_s0 }
0x1a1d   :  { %v793_v5 = vadd.f32 %v792_v54, %v2295_v22 }
0x1a1f   :  { %v1750_v6 = vmul.f32 -1.442695, %v793_v5 }
0x1a8e   :  { %v1228_v37 = vpop.permute.xlu0 %1227 }
0x1a8f   :  { %1230 = vst.msk [vmem:[#allocation2 + $0x8] sm:$0x3] %vm291_vm11, %v1228_v37  ;;  %1769 = vmatmul.msk.f32.vlgmr.msra.gmra.mxu0 %vm223_vm3, %v1228_v37 }
0x1b0c   :  { %v1251_v40 = vpop.f32.mrf.mxu0 }
0x1b0d   :  { %v1254_v41 = vadd.f32 %v1251_v40, %v1231_v39 }
0x1b0f   :  { %v1770_v42 = vmul.f32 -1.442695, %v1254_v41 }
0x1b11   :  { %1906 = vpow2.f32 %v1770_v42 }
0x1b17   :  { %v1907_v43 = vpop.eup %1906 }
0x1b18   :  { %v1259_v44 = vadd.f32 1.0, %v1907_v43 }
0x1b1a   :  { %1908 = vrcp.f32 %v1259_v44  ;;  %v1271_v48 = vand.u32 2147483648, %v1259_v44  ;;  %v1269_v50 = vand.u32 2147483647, %v1259_v44  ;;  %vm1265_vm13 = vweird.f32 %v1259_v44 }
0x1b1b   :  { %1910 = vtanh.f32 %v1254_v41 }
0x1b1c   :  { %v1272_v52 = vor.u32 1.1754944e-38, %v1271_v48  ;;  %vm1270_vm15 = vcmp.eq.f32.partialorder %v1269_v50, 8.507059e+37 }
0x1b20   :  { %v1909_v45 = vpop.eup %1908 }
0x1b21   :  { %v1261_v46 = vmul.f32 %v1909_v45, %v1259_v44  ;;  %vm1266_vm12 = vweird.f32 %v1909_v45  ;;  %v1911_v55 = vpop.eup %1910 }
0x1b22   :  { %vm1267_vm14 = vmor %vm1265_vm13, %vm1266_vm12 }
0x1b23   :  { %v1262_v47 = vsub.f32 1.0, %v1261_v46 }
0x1b25   :  { %v1263_v49 = vmul.f32 %v1909_v45, %v1262_v47 }
0x1b27   :  { %v1264_v51 = vadd.f32 %v1909_v45, %v1263_v49 }
0x1b29   :  { %v1268_v53 = vsel %vm1267_vm14, %v1909_v45, %v1264_v51 }
0x1b2a   :  { %v1273_v56 = vsel %vm1270_vm15, %v1272_v52, %v1268_v53 }
0x1b2b   :  { %v1275_v57 = vsel %vm2298_vm7, %v1911_v55, %v1273_v56 }
0x1b2c   :  { %1278 = vrot.lane.b32.xlu1 %v1275_v57, %s2125_s3  ;;  %v1276_v60 = vmul.f32 %v1275_v57, %v1219_v34 }
0x1b9e   :  { %v1279_v58 = vpop.permute.xlu1 %1278 }
0x1b9f   :  { %v1281_v59 = vmul.f32 %v1279_v58, %v1275_v57 }
0x1ba1   :  { %1283 = vrot.lane.b32.xlu2 %v1281_v59, %s2126_s0 }
0x1bfb   :  { %v1284_v61 = vpop.permute.xlu2 %1283 }
0x1bfc   :  { %v2523_v62 = vadd.f32 %v1284_v61, %v1276_v60 }
0x1bfe   :  { %1912 = vtanh.f32 %v2523_v62 }
0x1c04   :  { %v1913_v63 = vpop.eup %1912 }
0x1c05   :  { %1289 = vrot.lane.b32.xlu0 %v1913_v63, %s2125_s3 }
0x1c77   :  { %v1290_v0 = vpop.permute.xlu0 %1289 }
0x1c78   :  { %v1292_v2 = vmul.f32 %v1290_v0, %v1275_v57  ;;  %v1365_v57 = vld [vmem:[#allocation3 + $0xe] sm:$0x3] }
0x1c7a   :  { %1294 = vrot.lane.b32.xlu1 %v1292_v2, %s2126_s0 }
0x1cec   :  { %v1295_v13 = vpop.permute.xlu1 %1294 }
0x1ced   :  { %1297 = vst.msk [vmem:[#allocation2 + $0xa] sm:$0x3] %vm291_vm11, %v1295_v13  ;;  %1771 = vmatmul.msk.f32.vlgmr.msra.gmra.mxu3 %vm223_vm3, %v1295_v13 }
0x1cf5   :  { %1780 = vmatmul.msk.f32.vlgmr.msrb.gmra.mxu3 %vm223_vm3, %v2542_v14 }
0x1d70   :  { %v1318_v15 = vpop.f32.mrf.mxu3 }
0x1d71   :  { %v1321_v16 = vadd.f32 %v1318_v15, %v1298_v3 }
0x1d73   :  { %v1772_v10 = vmul.f32 -1.442695, %v1321_v16 }
0x1d75   :  { %1914 = vpow2.f32 %v1772_v10 }
0x1d7b   :  { %v1915_v17 = vpop.eup %1914 }
0x1d7c   :  { %v1326_v18 = vadd.f32 1.0, %v1915_v17 }
0x1d7e   :  { %1916 = vrcp.f32 %v1326_v18  ;;  %v1338_v28 = vand.u32 2147483648, %v1326_v18  ;;  %v1336_v30 = vand.u32 2147483647, %v1326_v18  ;;  %vm1332_vm2 = vweird.f32 %v1326_v18 }
0x1d7f   :  { %1918 = vtanh.f32 %v1321_v16 }
0x1d80   :  { %v1339_v20 = vor.u32 1.1754944e-38, %v1338_v28  ;;  %vm1337_vm5 = vcmp.eq.f32.partialorder %v1336_v30, 8.507059e+37  ;;  %1920 = vpow2.f32 %v1750_v6  ;;  %v1513_v30 = vld [vmem:[%s2667_s9 + $0x18] sm:$0xff] }
0x1d81   :  { %1539 = vmatpush.msrb.mxu2 %v1513_v30 }
0x1d84   :  { %v1917_v19 = vpop.eup %1916 }
0x1d85   :  { %v1328_v26 = vmul.f32 %v1917_v19, %v1326_v18  ;;  %vm1333_vm0 = vweird.f32 %v1917_v19  ;;  %v1919_v32 = vpop.eup %1918 }
0x1d86   :  { %vm1334_vm4 = vmor %vm1332_vm2, %vm1333_vm0  ;;  %v1921_v7 = vpop.eup %1920 }
0x1d87   :  { %v1329_v27 = vsub.f32 1.0, %v1328_v26  ;;  %v798_v34 = vadd.f32 1.0, %v1921_v7 }
0x1d89   :  { %v1330_v29 = vmul.f32 %v1917_v19, %v1329_v27  ;;  %1922 = vrcp.f32 %v798_v34  ;;  %v810_v42 = vand.u32 2147483648, %v798_v34  ;;  %vm804_vm8 = vweird.f32 %v798_v34 }
0x1d8a   :  { %v808_v43 = vand.u32 2147483647, %v798_v34  ;;  %1924 = vtanh.f32 %v793_v5 }
0x1d8b   :  { %v1331_v31 = vadd.f32 %v1917_v19, %v1330_v29  ;;  %v811_v25 = vor.u32 1.1754944e-38, %v810_v42 }
0x1d8c   :  { %vm809_vm10 = vcmp.eq.f32.partialorder %v808_v43, 8.507059e+37 }
0x1d8d   :  { %v1335_v21 = vsel %vm1334_vm4, %v1917_v19, %v1331_v31  ;;  %v1512_v31 = vld [vmem:[%s2667_s9 + $0x10] sm:$0xff] }
0x1d8e   :  { %v1340_v23 = vsel %vm1337_vm5, %v1339_v20, %v1335_v21  ;;  %v1511_v20 = vld [vmem:[%s2667_s9 + $0x8] sm:$0xff]  ;;  %1540 = vmatpush.msrb.mxu2 %v1512_v31  ;;  %v1510_v21 = vld [vmem:[%s2667_s9] sm:$0xff] }
0x1d8f   :  { %v1342_v24 = vsel %vm2298_vm7, %v1919_v32, %v1340_v23  ;;  %v1923_v12 = vpop.eup %1922 }
0x1d90   :  { %1345 = vrot.lane.b32.xlu2 %v1342_v24, %s2125_s3  ;;  %v800_v35 = vmul.f32 %v1923_v12, %v798_v34  ;;  %vm805_vm6 = vweird.f32 %v1923_v12  ;;  %v1925_v45 = vpop.eup %1924  ;;  %v1343_v47 = vmul.f32 %v1342_v24, %v2523_v62  ;;  %1541 = vmatpush.msrb.mxu2 %v1511_v20 }
0x1d91   :  { %vm806_vm9 = vmor %vm804_vm8, %vm805_vm6  ;;  %vm1590_vm6 = vcmask 23552  }
0x1d92   :  { %v801_v36 = vsub.f32 1.0, %v800_v35  ;;  %1542 = vmatpush.msrb.mxu2 %v1510_v21 }
0x1d94   :  { %v802_v37 = vmul.f32 %v1923_v12, %v801_v36 }
0x1d96   :  { %v803_v40 = vadd.f32 %v1923_v12, %v802_v37 }
0x1d98   :  { %v807_v22 = vsel %vm806_vm9, %v1923_v12, %v803_v40  ;;  %v1964_v12 = vld [vmem:[%s2666_s8 + $0x1] ss:$0 sm:$0xff] }
0x1d99   :  { %v812_v44 = vsel %vm809_vm10, %v811_v25, %v807_v22 }
0x1d9a   :  { %v814_v46 = vsel %vm2298_vm7, %v1925_v45, %v812_v44 }
0x1d9b   :  { %v815_v13 = vmul.f32 %v814_v46, %v2471_v1 }
0x1dea   :  { %v1346_v39 = vpop.permute.xlu2 %1345 }
0x1deb   :  { %v1348_v41 = vmul.f32 %v1346_v39, %v1342_v24 }
0x1ded   :  { %1350 = vrot.lane.b32.xlu0 %v1348_v41, %s2126_s0 }
0x1df5   :  { %817 = vrot.lane.b32.xlu0 %v814_v46, %s2125_s3 }
0x1e5f   :  { %v1351_v48 = vpop.permute.xlu0 %1350 }
0x1e60   :  { %v1353_v49 = vadd.f32 %v1351_v48, %v1343_v47 }
0x1e62   :  { %1926 = vtanh.f32 %v1353_v49 }
0x1e67   :  { %v818_v53 = vpop.permute.xlu0 %817 }
0x1e68   :  { %v1927_v50 = vpop.eup %1926  ;;  %v820_v55 = vmul.f32 %v818_v53, %v814_v46 }
0x1e69   :  { %1356 = vrot.lane.b32.xlu1 %v1927_v50, %s2125_s3 }
0x1edb   :  { %v1357_v51 = vpop.permute.xlu1 %1356 }
0x1edc   :  { %v1359_v52 = vmul.f32 %v1357_v51, %v1342_v24 }
0x1ede   :  { %1361 = vrot.lane.b32.xlu2 %v1359_v52, %s2126_s0 }
0x1ee6   :  { %822 = vrot.lane.b32.xlu2 %v820_v55, %s2126_s0 }
0x1f38   :  { %v1362_v56 = vpop.permute.xlu2 %1361 }
0x1f39   :  { %1364 = vst.msk [vmem:[#allocation2 + $0xc] sm:$0x3] %vm291_vm11, %v1362_v56  ;;  %1773 = vmatmul.msk.f32.vlgmr.msrb.gmra.mxu1 %vm223_vm3, %v1362_v56 }
0x1f40   :  { %v823_v11 = vpop.permute.xlu2 %822 }
0x1f41   :  { %v2562_v16 = vadd.f32 %v823_v11, %v815_v13 }
0x1fb6   :  { %v1385_v58 = vpop.f32.mrf.mxu1 }
0x1fb7   :  { %v1388_v59 = vadd.f32 %v1385_v58, %v1365_v57  ;;  %v1798_v57 = vld [vmem:[%s2670_s12] ss:$0 sm:$0xff]  ;;  %v1581_v58 = vpop.f32.mrf.mxu3  ;;  %s2127_s12 = smov 96  }
0x1fb9   :  { %v1774_v60 = vmul.f32 -1.442695, %v1388_v59 }
0x1fbb   :  { %1928 = vpow2.f32 %v1774_v60 }
0x1fc1   :  { %v1929_v61 = vpop.eup %1928 }
0x1fc2   :  { %v1393_v62 = vadd.f32 1.0, %v1929_v61 }
0x1fc4   :  { %1930 = vrcp.f32 %v1393_v62  ;;  %v1405_v4 = vand.u32 2147483648, %v1393_v62  ;;  %v1403_v9 = vand.u32 2147483647, %v1393_v62  ;;  %vm1399_vm13 = vweird.f32 %v1393_v62 }
0x1fc5   :  { %1932 = vtanh.f32 %v1388_v59  ;;  %v1582_v59 = vadd.f32 %v1798_v57, %v1581_v58 }
0x1fc6   :  { %v1406_v15 = vor.u32 1.1754944e-38, %v1405_v4  ;;  %vm1404_vm15 = vcmp.eq.f32.partialorder %v1403_v9, 8.507059e+37  ;;  %1934 = vtanh.f32 %v2562_v16 }
0x1fc7   :  { %v1591_v60 = vsel %vm1590_vm6, %v1582_v59, -inf }
0x1fca   :  { %v1931_v63 = vpop.eup %1930 }
0x1fcb   :  { %v1395_v0 = vmul.f32 %v1931_v63, %v1393_v62  ;;  %vm1400_vm12 = vweird.f32 %v1931_v63  ;;  %v1933_v17 = vpop.eup %1932 }
0x1fcc   :  { %vm1401_vm14 = vmor %vm1399_vm13, %vm1400_vm12  ;;  %v1935_v26 = vpop.eup %1934  ;;  %vm1676_vm12 = vcmask 15360  }
0x1fcd   :  { %v1396_v2 = vsub.f32 1.0, %v1395_v0 }
0x1fcf   :  { %v1397_v8 = vmul.f32 %v1931_v63, %v1396_v2 }
0x1fd1   :  { %v1398_v3 = vadd.f32 %v1931_v63, %v1397_v8 }
0x1fd3   :  { %v1402_v10 = vsel %vm1401_vm14, %v1931_v63, %v1398_v3 }
0x1fd4   :  { %v1407_v18 = vsel %vm1404_vm15, %v1406_v15, %v1402_v10 }
0x1fd5   :  { %v1409_v19 = vsel %vm2298_vm7, %v1933_v17, %v1407_v18 }
0x1fd6   :  { %1412 = vrot.lane.b32.xlu1 %v1409_v19, %s2125_s3  ;;  %v1410_v32 = vmul.f32 %v1409_v19, %v1353_v49 }
0x1fde   :  { %828 = vrot.lane.b32.xlu1 %v1935_v26, %s2125_s3 }
0x2048   :  { %v1413_v1 = vpop.permute.xlu1 %1412 }
0x2049   :  { %v1415_v27 = vmul.f32 %v1413_v1, %v1409_v19 }
0x204b   :  { %1417 = vrot.lane.b32.xlu0 %v1415_v27, %s2126_s0 }
0x2050   :  { %v829_v28 = vpop.permute.xlu1 %828 }
0x2051   :  { %v831_v29 = vmul.f32 %v829_v28, %v814_v46 }
0x2053   :  { %833 = vrot.lane.b32.xlu0 %v831_v29, %s2126_s0 }
0x20bd   :  { %v1418_v23 = vpop.permute.xlu0 %1417 }
0x20be   :  { %v1420_v24 = vadd.f32 %v1418_v23, %v1410_v32 }
0x20c0   :  { %1936 = vtanh.f32 %v1420_v24 }
0x20c5   :  { %v834_v33 = vpop.permute.xlu0 %833 }
0x20c6   :  { %v1937_v54 = vpop.eup %1936  ;;  %836 = vst.msk [vmem:[#allocation2 + $0x10] sm:$0x3] %vm291_vm11, %v834_v33 }
0x20c7   :  { %837 = vst.msk [vmem:[#allocation12] sm:$0x3] %vm291_vm11, %v834_v33  ;;  %1423 = vrot.lane.b32.xlu2 %v1937_v54, %s2125_s3 }
0x20cd   :  { %v845_v5 = vld [vmem:[#allocation2 + $0x10] sm:$0x3] }
0x20ce   :  { %1754 = vmatmul.msk.f32.gmra.mxu2 %vm223_vm3, %v845_v5 }
0x20d6   :  { %1777 = vmatmul.msk.f32.vlgmr.msrb.gmra.mxu2 %vm223_vm3, %v2542_v14 }
0x2121   :  { %v1424_v6 = vpop.permute.xlu2 %1423 }
0x2122   :  { %v1426_v7 = vmul.f32 %v1424_v6, %v1409_v19 }
0x2124   :  { %1428 = vrot.lane.b32.xlu1 %v1426_v7, %s2126_s0 }
0x2151   :  { %v887_v34 = vpop.f32.mrf.mxu2 }
0x2152   :  { %v888_v35 = vadd.f32 %v1964_v12, %v887_v34 }
0x2154   :  { %892 = vst [vmem:[#allocation3 + $0x10] sm:$0x3] %v888_v35 }
0x215b   :  { %v1432_v14 = vld [vmem:[#allocation3 + $0x10] sm:$0x3] }
0x2196   :  { %v1429_v36 = vpop.permute.xlu1 %1428 }
0x2197   :  { %1431 = vst.msk [vmem:[#allocation2 + $0xe] sm:$0x3] %vm291_vm11, %v1429_v36  ;;  %1775 = vmatmul.msk.f32.vlgmr.msrb.gmra.mxu0 %vm223_vm3, %v1429_v36  ;;  %v1544_v36 = vpop.f32.mrf.mxu2 }
0x219e   :  { %v1508_v37 = vld [vmem:[#allocation2 + $0x8] sm:$0xff] }
0x219f   :  { %1778 = vmatmul.msk.f32.gmra.mxu2 %vm223_vm3, %v1508_v37  ;;  %1781 = vmatmul.msk.f32.gmra.mxu3 %vm223_vm3, %v1508_v37 }
0x2214   :  { %v1452_v39 = vpop.f32.mrf.mxu0 }
0x2215   :  { %v1455_v40 = vadd.f32 %v1452_v39, %v1432_v14  ;;  %v2623_v14 = vld [vmem:[%s2668_s10] ss:$0 sm:$0xff]  ;;  %s2129_s10 = smov [#allocation12]  }
0x2216   :  { %s1690_s7 = sshll.u32 %s2129_s10, 4  ;;  %s1691_s7 = int_to_ptr.vmem [resolvable:$true] %s1690_s7 }
0x2217   :  { %v1776_v41 = vmul.f32 -1.442695, %v1455_v40 }
0x2219   :  { %1938 = vpow2.f32 %v1776_v41 }
0x221f   :  { %v1939_v42 = vpop.eup %1938 }
0x2220   :  { %v1460_v43 = vadd.f32 1.0, %v1939_v42 }
0x2222   :  { %1940 = vrcp.f32 %v1460_v43  ;;  %v1472_v45 = vand.u32 2147483648, %v1460_v43  ;;  %v1470_v47 = vand.u32 2147483647, %v1460_v43  ;;  %vm1466_vm2 = vweird.f32 %v1460_v43  ;;  %v1584_v0 = vpop.f32.mrf.mxu3  ;;  %v1547_v37 = vpop.f32.mrf.mxu2 }
0x2223   :  { %1942 = vtanh.f32 %v1455_v40  ;;  %v1585_v2 = vadd.f32 %v1798_v57, %v1584_v0  ;;  %v1548_v39 = vadd.f32 %v2623_v14, %v1547_v37 }
0x2224   :  { %v1473_v49 = vor.u32 1.1754944e-38, %v1472_v45  ;;  %vm1471_vm5 = vcmp.eq.f32.partialorder %v1470_v47, 8.507059e+37 }
0x2225   :  { %v1594_v4 = vsel %vm1590_vm6, %v1585_v2, -inf }
0x2228   :  { %v1941_v22 = vpop.eup %1940 }
0x2229   :  { %v1462_v25 = vmul.f32 %v1941_v22, %v1460_v43  ;;  %vm1467_vm0 = vweird.f32 %v1941_v22  ;;  %v1943_v51 = vpop.eup %1942 }
0x222a   :  { %vm1468_vm4 = vmor %vm1466_vm2, %vm1467_vm0 }
0x222b   :  { %v1463_v44 = vsub.f32 1.0, %v1462_v25 }
0x222d   :  { %v1464_v46 = vmul.f32 %v1941_v22, %v1463_v44 }
0x222f   :  { %v1465_v48 = vadd.f32 %v1941_v22, %v1464_v46 }
0x2231   :  { %v1469_v50 = vsel %vm1468_vm4, %v1941_v22, %v1465_v48 }
0x2232   :  { %v1474_v52 = vsel %vm1471_vm5, %v1473_v49, %v1469_v50 }
0x2233   :  { %v1476_v53 = vsel %vm2298_vm7, %v1943_v51, %v1474_v52 }
0x2234   :  { %1479 = vrot.lane.b32.xlu2 %v1476_v53, %s2125_s3  ;;  %v1477_v61 = vmul.f32 %v1476_v53, %v1420_v24 }
0x228e   :  { %v1480_v55 = vpop.permute.xlu2 %1479 }
0x228f   :  { %v1482_v56 = vmul.f32 %v1480_v55, %v1476_v53 }
0x2291   :  { %1484 = vrot.lane.b32.xlu0 %v1482_v56, %s2126_s0 }
0x22bb   :  { %1592 = vmax.xlane.f32.xlu0 %v1591_v60 }
0x2303   :  { %v1485_v62 = vpop.permute.xlu0 %1484 }
0x2304   :  { %v1487_v38 = vadd.f32 %v1485_v62, %v1477_v61 }
0x2306   :  { %1944 = vtanh.f32 %v1487_v38 }
0x230c   :  { %v1945_v63 = vpop.eup %1944 }
0x230d   :  { %1490 = vrot.lane.b32.xlu1 %v1945_v63, %s2125_s3  ;;  %s2128_s3 = smov 2  }
0x232e   :  { %v1593_v19 = vpop.xlane.xlu0 %1592 }
0x232f   :  { %v1601_v54 = vsub.f32 %v1582_v59, %v1593_v19 }
0x2331   :  { %v1604_v5 = vmul.f32 1.442695, %v1601_v54 }
0x2337   :  { %1595 = vmax.xlane.f32.xlu1 %v1594_v4 }
0x237f   :  { %v1491_v8 = vpop.permute.xlu1 %1490 }
0x2380   :  { %v1493_v9 = vmul.f32 %v1491_v8, %v1476_v53 }
0x2382   :  { %1495 = vrot.lane.b32.xlu2 %v1493_v9, %s2126_s0 }
0x23aa   :  { %v1596_v11 = vpop.xlane.xlu1 %1595 }
0x23ab   :  { %v1602_v13 = vsub.f32 %v1585_v2, %v1596_v11  ;;  %v1545_v2 = vadd.f32 %v2623_v14, %v1544_v36 }
0x23ad   :  { %v1606_v3 = vmul.f32 1.442695, %v1602_v13 }
0x23af   :  { %1946 = vpow2.f32 %v1606_v3 }
0x23b5   :  { %v1947_v15 = vpop.eup %1946 }
0x23b6   :  { %v1613_v10 = vsel %vm1590_vm6, %v1947_v15, 0.0 }
0x23b7   :  { %1614 = vadd.xlane.f32.xlu0 %v1613_v10 }
0x23cb   :  { %1502 = vrot.lane.b32.xlu0 %v1487_v38, %s2127_s12 }
0x23dc   :  { %v1496_v17 = vpop.permute.xlu2 %1495 }
0x23dd   :  { %1498 = vst.msk [vmem:[#allocation2 + $0x10] sm:$0x3] %vm291_vm11, %v1496_v17 }
0x23de   :  { %1500 = vst.msk [vmem:[#allocation12 + $0x2] sm:$0x3] %vm291_vm11, %v1496_v17 }
0x23df   :  { %1698 = dma.vmem_to_hbm [thread:$0]  %s1691_s7, 64, %s1693_s20, [#allocation6], %s2126_s0, %s2126_s0, %s2128_s3  }
0x23e4   :  { %v1509_v18 = vld [vmem:[#allocation2 + $0x10] sm:$0x3] }
0x23e5   :  { %1779 = vmatmul.msk.f32.gmra.mxu2 %vm223_vm3, %v1509_v18  ;;  %1782 = vmatmul.msk.f32.gmra.mxu3 %vm223_vm3, %v1509_v18  ;;  %vm1597_vm3 = vcmask 17408  }
0x242a   :  { %v1615_v26 = vpop.xlane.xlu0 %1614 }
0x242b   :  { %1948 = vrcp.f32 %v1615_v26  ;;  %v1645_v29 = vand.u32 2147483648, %v1615_v26  ;;  %v1643_v31 = vand.u32 2147483647, %v1615_v26  ;;  %vm1639_vm8 = vweird.f32 %v1615_v26 }
0x242c   :  { %1950 = vpow2.f32 %v1604_v5 }
0x242d   :  { %v1646_v21 = vor.u32 1.1754944e-38, %v1645_v29  ;;  %vm1644_vm10 = vcmp.eq.f32.partialorder %v1643_v31, 8.507059e+37  ;;  %1952 = vtanh.f32 %v1548_v39 }
0x2431   :  { %v1949_v1 = vpop.eup %1948 }
0x2432   :  { %v1635_v27 = vmul.f32 %v1949_v1, %v1615_v26  ;;  %vm1640_vm7 = vweird.f32 %v1949_v1  ;;  %v1951_v12 = vpop.eup %1950 }
0x2433   :  { %vm1641_vm9 = vmor %vm1639_vm8, %vm1640_vm7  ;;  %v1610_v35 = vsel %vm1590_vm6, %v1951_v12, 0.0  ;;  %v1953_v40 = vpop.eup %1952  ;;  %vm1682_vm6 = vcmask 33792  }
0x2434   :  { %v1636_v28 = vsub.f32 1.0, %v1635_v27 }
0x2436   :  { %v1637_v30 = vmul.f32 %v1949_v1, %v1636_v28 }
0x2438   :  { %v1638_v20 = vadd.f32 %v1949_v1, %v1637_v30 }
0x243a   :  { %v1642_v32 = vsel %vm1641_vm9, %v1949_v1, %v1638_v20 }
0x243b   :  { %v1647_v23 = vsel %vm1644_vm10, %v1646_v21, %v1642_v32 }
0x243c   :  { %v1648_v24 = vmul.f32 %v1947_v15, %v1647_v23 }
0x243d   :  { %v1503_v33 = vpop.permute.xlu0 %1502 }
0x243e   :  { %1506 = vst.msk [vmem:[#allocation13 + $0x2] sm:$0x3] %vm291_vm11, %v1503_v33  ;;  %1669 = vrot.lane.b32.xlu0 %v1648_v24, %s2128_s3 }
0x2468   :  { %v1587_v6 = vpop.f32.mrf.mxu3  ;;  %v1550_v17 = vpop.f32.mrf.mxu2 }
0x2469   :  { %v1588_v7 = vadd.f32 %v1798_v57, %v1587_v6  ;;  %v1551_v18 = vadd.f32 %v2623_v14, %v1550_v17 }
0x246b   :  { %v1598_v34 = vsel %vm1597_vm3, %v1588_v7, -inf }
0x246c   :  { %1599 = vmax.xlane.f32.xlu2 %v1598_v34 }
0x2474   :  { %1611 = vadd.xlane.f32.xlu2 %v1610_v35 }
0x248c   :  { %839 = vrot.lane.b32.xlu2 %v2562_v16, %s2127_s12 }
0x24b0   :  { %v1670_v41 = vpop.permute.xlu0 %1669 }
0x24b1   :  { %v1678_v42 = vsel %vm1676_vm12, %v1953_v40, %v1670_v41 }
0x24b2   :  { %1681 = vst.msk [vmem:[%s2671_s13 + $0x8] sm:$0xff] %vm146_vm1, %v1678_v42 }
0x24df   :  { %v1600_v16 = vpop.xlane.xlu2 %1599 }
0x24e0   :  { %v1603_v43 = vsub.f32 %v1588_v7, %v1600_v16 }
0x24e2   :  { %v1608_v22 = vmul.f32 1.442695, %v1603_v43 }
0x24e4   :  { %1954 = vpow2.f32 %v1608_v22 }
0x24e7   :  { %v1612_v25 = vpop.xlane.xlu2 %1611 }
0x24e8   :  { %1956 = vrcp.f32 %v1612_v25  ;;  %v1630_v52 = vand.u32 2147483648, %v1612_v25  ;;  %vm1624_vm14 = vweird.f32 %v1612_v25  ;;  %v1628_v53 = vand.u32 2147483647, %v1612_v25 }
0x24ea   :  { %v1955_v44 = vpop.eup %1954  ;;  %v1631_v56 = vor.u32 1.1754944e-38, %v1630_v52  ;;  %vm1629_vm0 = vcmp.eq.f32.partialorder %v1628_v53, 8.507059e+37 }
0x24eb   :  { %v1616_v45 = vsel %vm1597_vm3, %v1955_v44, 0.0 }
0x24ec   :  { %1617 = vadd.xlane.f32.xlu1 %v1616_v45 }
0x24ee   :  { %v1957_v46 = vpop.eup %1956 }
0x24ef   :  { %v1620_v47 = vmul.f32 %v1957_v46, %v1612_v25  ;;  %v840_v48 = vpop.permute.xlu2 %839  ;;  %vm1625_vm13 = vweird.f32 %v1957_v46 }
0x24f0   :  { %842 = vst.msk [vmem:[#allocation13] sm:$0x3] %vm291_vm11, %v840_v48  ;;  %vm1626_vm15 = vmor %vm1624_vm14, %vm1625_vm13 }
0x24f1   :  { %v1621_v49 = vsub.f32 1.0, %v1620_v47  ;;  %1711 = dma.vmem_to_hbm [thread:$0]  %s1704_s5, 64, %s1706_s11, [#allocation14], %s2126_s0, %s2126_s0, %s2128_s3  }
0x24f3   :  { %v1622_v50 = vmul.f32 %v1957_v46, %v1621_v49 }
0x24f5   :  { %v1623_v51 = vadd.f32 %v1957_v46, %v1622_v50 }
0x24f7   :  { %v1627_v55 = vsel %vm1626_vm15, %v1957_v46, %v1623_v51 }
0x24f8   :  { %v1632_v57 = vsel %vm1629_vm0, %v1631_v56, %v1627_v55 }
0x24f9   :  { %v1633_v58 = vmul.f32 %v1951_v12, %v1632_v57 }
0x2505   :  { %1667 = vrot.lane.b32.xlu1 %v1633_v58, %s2128_s3 }
0x255f   :  { %v1618_v59 = vpop.xlane.xlu1 %1617 }
0x2560   :  { %1958 = vrcp.f32 %v1618_v59  ;;  %v1660_v38 = vand.u32 2147483648, %v1618_v59  ;;  %v1658_v0 = vand.u32 2147483647, %v1618_v59  ;;  %vm1654_vm2 = vweird.f32 %v1618_v59 }
0x2561   :  { %1960 = vtanh.f32 %v1545_v2 }
0x2562   :  { %v1661_v8 = vor.u32 1.1754944e-38, %v1660_v38  ;;  %vm1659_vm5 = vcmp.eq.f32.partialorder %v1658_v0, 8.507059e+37  ;;  %1962 = vtanh.f32 %v1551_v18 }
0x2566   :  { %v1959_v60 = vpop.eup %1958 }
0x2567   :  { %v1650_v61 = vmul.f32 %v1959_v60, %v1618_v59  ;;  %vm1655_vm11 = vweird.f32 %v1959_v60  ;;  %v1961_v3 = vpop.eup %1960 }
0x2568   :  { %vm1656_vm4 = vmor %vm1654_vm2, %vm1655_vm11  ;;  %v1963_v19 = vpop.eup %1962 }
0x2569   :  { %v1651_v62 = vsub.f32 1.0, %v1650_v61 }
0x256b   :  { %v1652_v63 = vmul.f32 %v1959_v60, %v1651_v62 }
0x256d   :  { %v1653_v4 = vadd.f32 %v1959_v60, %v1652_v63 }
0x256f   :  { %v1657_v9 = vsel %vm1656_vm4, %v1959_v60, %v1653_v4 }
0x2570   :  { %v1662_v11 = vsel %vm1659_vm5, %v1661_v8, %v1657_v9 }
0x2571   :  { %v1663_v13 = vmul.f32 %v1955_v44, %v1662_v11 }
0x2573   :  { %1671 = vrot.lane.b32.xlu2 %v1663_v13, %s2128_s3 }
0x2577   :  { %v1668_v15 = vpop.permute.xlu1 %1667 }
0x2578   :  { %v1677_v10 = vsel %vm1676_vm12, %v1961_v3, %v1668_v15 }
0x2579   :  { %1680 = vst.msk [vmem:[%s2671_s13] sm:$0xff] %vm146_vm1, %v1677_v10 }
0x25cd   :  { %v1672_v26 = vpop.permute.xlu2 %1671 }
0x25ce   :  { %v1679_v1 = vsel %vm1676_vm12, %v1963_v19, %v1672_v26 }
0x25cf   :  { %1683 = vst.msk [vmem:[%s2671_s13 + $0x10] sm:$0x3] %vm1682_vm6, %v1679_v1 }
0x25d0   :  { %2115 = dma.done.wait [#allocation6], 64  }
0x25d1   :  { %2116 = vsyncadd [#allocation6], 4294967232 }
0x25d2   :  { %2117 = dma.done.wait [#allocation14], 64  }
0x25d3   :  { %2118 = vsyncadd [#allocation14], 4294967232 }
0x25d4   :  { %1722 = vsyncpa [#allocation5], 1 }
0x25d5   :  { %1723 = vsyncpa [#allocation8], 1 }
0x25d6   :  { %1724 = vsyncpa [#allocation11], 1 }
0x25d7   :  { %1725 = vsyncpa [#allocation6], 1 }
0x25d8   :  { %1726 = vsyncpa [#allocation14], 1 }

</bundles_post_ra>
